<compile_context>
chip_gen: v6e
topology: v6e:2x2x1
jax: 0.10.0
libtpu: 0.0.40
codegen_flags: <defaults>
</compile_context>

<pallas_src>
import functools
import math

import jax
import jax.numpy as jnp
from jax import lax
from jax.experimental import pallas as pl
from jax.experimental.pallas import tpu as pltpu


def _stack_kernel(x_ref, pos_ref, cos_ref, sin_ref,
                  wqkv_ref, bqkv_ref, dw_ref, db_ref,
                  wout_ref, bout_ref, ln_g_ref, ln_b_ref,
                  w1_ref, w2_ref,
                  o_ref, x_sc,
                  *, n_head, head_dim, ffn_chunk):
    S, D = x_sc.shape
    half = head_dim // 2
    layer = pl.program_id(1)
    n_layer = pl.num_programs(1)

    # layer 0: pull the residual stream for this batch element into VMEM scratch
    @pl.when(layer == 0)
    def _():
        x_sc[...] = x_ref[0]

    x_bf = x_sc[...]                                  # (S, D) bf16 residual stream
    h = x_bf + pos_ref[0]                             # pos_emb feeds only attention

    # ---- qkv projection: bf16 @ bf16 -> f32 accumulation on the MXU ----
    qkv = jnp.dot(h, wqkv_ref[0], preferred_element_type=jnp.float32)
    qkv = qkv + bqkv_ref[0].astype(jnp.float32)       # (S, 3D) f32

    # ---- causal depthwise conv1d, kernel=3, along sequence (Conv1d(pad=2)[..., :-2]) ----
    dw = dw_ref[0].astype(jnp.float32)                # (3, 3D) taps [t-2, t-1, t]
    db = db_ref[0].astype(jnp.float32)                # (1, 3D)
    C = qkv.shape[1]
    z1 = jnp.zeros((1, C), jnp.float32)
    z2 = jnp.zeros((2, C), jnp.float32)
    shift1 = jnp.concatenate([z1, qkv[:-1, :]], axis=0)
    shift2 = jnp.concatenate([z2, qkv[:-2, :]], axis=0)
    qkv = shift2 * dw[0:1, :] + shift1 * dw[1:2, :] + qkv * dw[2:3, :] + db
    qkv = qkv.astype(jnp.bfloat16)                    # back to bf16 stream (matches ref)

    # ---- rotary tables + causal mask (hoisted out of the head loop) ----
    cos = cos_ref[...]                                # (S, head_dim // 2) f32
    sin = sin_ref[...]
    row = lax.broadcasted_iota(jnp.int32, (S, S), 0)
    col = lax.broadcasted_iota(jnp.int32, (S, S), 1)
    neg_mask = jnp.where(col <= row, 0.0, -1e30).astype(jnp.float32)
    scale = 1.0 / math.sqrt(head_dim)

    wout = wout_ref[0]                                # (D, D) bf16, loaded once

    # ---- per-head attention with the output projection folded in ----
    att = jnp.zeros((S, D), jnp.float32)
    for hi in range(n_head):
        q = qkv[:, hi * head_dim:(hi + 1) * head_dim].astype(jnp.float32)
        k = qkv[:, D + hi * head_dim:D + (hi + 1) * head_dim].astype(jnp.float32)
        v = qkv[:, 2 * D + hi * head_dim:2 * D + (hi + 1) * head_dim]   # bf16

        # full rotary (GPT-NeoX split-half), rotary_dim == head_dim
        q1, q2 = q[:, :half], q[:, half:]
        k1, k2 = k[:, :half], k[:, half:]
        q = jnp.concatenate([q1 * cos - q2 * sin, q1 * sin + q2 * cos], axis=1)
        k = jnp.concatenate([k1 * cos - k2 * sin, k1 * sin + k2 * cos], axis=1)

        # causal scaled-dot-product attention (scores/softmax in f32)
        s = lax.dot_general(q.astype(jnp.bfloat16), k.astype(jnp.bfloat16),
                            (((1,), (1,)), ((), ())),
                            preferred_element_type=jnp.float32)
        s = s * scale + neg_mask
        m = jnp.max(s, axis=-1, keepdims=True)
        p = jnp.exp(s - m)
        inv_l = pl.reciprocal(jnp.sum(p, axis=-1, keepdims=True), approx=True)
        attn = (p * inv_l).astype(jnp.bfloat16)
        out_h = jnp.dot(attn, v, preferred_element_type=jnp.float32)

        # fold out_proj: accumulate this head's slice of wout (no concat needed)
        att += jnp.dot(out_h.astype(jnp.bfloat16),
                       wout[hi * head_dim:(hi + 1) * head_dim, :],
                       preferred_element_type=jnp.float32)

    # residual with ORIGINAL x + out-proj bias (added once)
    x1 = x_bf.astype(jnp.float32) + att + bout_ref[0].astype(jnp.float32)

    # ---- LayerNorm (eps = 1e-5), stats in f32 ----
    mu = jnp.mean(x1, axis=-1, keepdims=True)
    var = jnp.mean((x1 - mu) ** 2, axis=-1, keepdims=True)
    xn = (x1 - mu) * lax.rsqrt(var + 1e-5)
    xn = xn * ln_g_ref[0].astype(jnp.float32) + ln_b_ref[0].astype(jnp.float32)
    xn_bf = xn.astype(jnp.bfloat16)

    # ---- GELU feed-forward (bias=False), dropout=0, chunked over hidden ----
    # TODO(synk): exact-erf GELU approximated by tanh GELU for TPU lowering safety.
    Hdim = w1_ref.shape[2]
    ff = jnp.zeros((S, D), jnp.float32)
    for c0 in range(0, Hdim, ffn_chunk):
        c1 = min(Hdim, c0 + ffn_chunk)
        hdn = jnp.dot(xn_bf, w1_ref[0, :, c0:c1], preferred_element_type=jnp.float32)
        hdn = jax.nn.gelu(hdn, approximate=True)
        ff += jnp.dot(hdn.astype(jnp.bfloat16), w2_ref[0, c0:c1, :],
                      preferred_element_type=jnp.float32)

    new_x = (x1 + ff).astype(x_sc.dtype)
    x_sc[...] = new_x                                 # carry stream to next layer

    @pl.when(layer == n_layer - 1)
    def _():
        o_ref[0] = new_x


def block_sequence(x, pos_emb, pos_dist_emb, params, cos, sin, n_head, ffn_chunk=512):
    """Full BlockSequence (n_layer fused Blocks) as a single pallas_call.

    grid = (batch, layer): batch is 'parallel' (megacore sharding), layer is
    'arbitrary'.  Activations stay in VMEM scratch across layers; per-layer
    weights are streamed/prefetched by the BlockSpec pipeline on the layer axis.
    """
    del pos_dist_emb  # unused by the reference forward
    B, S, D = x.shape
    L = params["wqkv"].shape[0]
    Hdim = params["w1"].shape[2]
    head_dim = D // n_head

    kernel = functools.partial(_stack_kernel, n_head=n_head, head_dim=head_dim,
                               ffn_chunk=min(ffn_chunk, Hdim))

    act_spec = pl.BlockSpec((1, S, D), lambda b, l: (b, 0, 0))

    def w_spec(arr):  # one layer's slice, indexed by the layer grid axis
        nd = arr.ndim
        return pl.BlockSpec((1,) + arr.shape[1:], lambda b, l: (l,) + (0,) * (nd - 1))

    def full_spec(arr):  # whole array, constant across the grid
        nd = arr.ndim
        return pl.BlockSpec(arr.shape, lambda b, l: (0,) * nd)

    w_order = ["wqkv", "bqkv", "dw", "db", "wout", "bout", "ln_g", "ln_b", "w1", "w2"]
    weights = [params[k] for k in w_order]

    in_specs = ([act_spec, act_spec, full_spec(cos), full_spec(sin)]
                + [w_spec(w) for w in weights])

    return pl.pallas_call(
        kernel,
        out_shape=jax.ShapeDtypeStruct((B, S, D), x.dtype),
        grid=(B, L),
        in_specs=in_specs,
        out_specs=pl.BlockSpec((1, S, D), lambda b, l: (b, 0, 0)),
        scratch_shapes=[pltpu.VMEM((S, D), x.dtype)],
        compiler_params=pltpu.CompilerParams(
            dimension_semantics=("parallel", "arbitrary")),
    )(x, pos_emb, cos, sin, *weights)


def init_stacked_params(key, n_layer, D, hidden, dtype=jnp.bfloat16):
    """Per-layer weights stacked on a leading layer axis, stored [in, out]."""
    ks = jax.random.split(key, 8)
    s = 0.02
    L = n_layer
    return {
        "wqkv": (jax.random.normal(ks[0], (L, D, 3 * D), jnp.float32) * s).astype(dtype),
        "bqkv": (jax.random.normal(ks[1], (L, 1, 3 * D), jnp.float32) * s).astype(dtype),
        "dw":   (jax.random.normal(ks[2], (L, 3, 3 * D), jnp.float32) * 0.1).astype(dtype),
        "db":   (jax.random.normal(ks[3], (L, 1, 3 * D), jnp.float32) * s).astype(dtype),
        "wout": (jax.random.normal(ks[4], (L, D, D), jnp.float32) * s).astype(dtype),
        "bout": (jax.random.normal(ks[5], (L, 1, D), jnp.float32) * s).astype(dtype),
        "ln_g": jnp.ones((L, 1, D), dtype),
        "ln_b": jnp.zeros((L, 1, D), dtype),
        "w1":   (jax.random.normal(ks[6], (L, D, hidden), jnp.float32) * s).astype(dtype),
        "w2":   (jax.random.normal(ks[7], (L, hidden, D), jnp.float32) * s).astype(dtype),
    }


def make_rotary_tables(S, head_dim):
    inv_freq = 1.0 / (10000.0 ** (jnp.arange(0, head_dim, 2, dtype=jnp.float32) / head_dim))
    t = jnp.arange(S, dtype=jnp.float32)
    freqs = jnp.outer(t, inv_freq)                    # (S, head_dim // 2)
    return jnp.cos(freqs), jnp.sin(freqs)


if __name__ == "__main__":
    # small config: batch=2, seq=8, n_embed=32, n_head=4 (head_size=8), hidden=64, n_layer=2
    # NOTE: for production shapes, D / 3D / hidden should be multiples of 128
    # (lane-dense outputs) and S a multiple of 8; the demo shapes are tiny on purpose.
    B, S, D, n_head, hidden, n_layer = 2, 8, 32, 4, 64, 2
    dtype = jnp.bfloat16  # module asserts bfloat16 precision

    key = jax.random.PRNGKey(0)
    kx, kp, kd, kw = jax.random.split(key, 4)
    x = jax.random.normal(kx, (B, S, D), jnp.float32).astype(dtype)
    pos_emb = jax.random.normal(kp, (B, S, D), jnp.float32).astype(dtype)
    pos_dist_emb = jax.random.normal(kd, (B, S, D), jnp.float32).astype(dtype)  # unused

    params = init_stacked_params(kw, n_layer, D, hidden, dtype)
    cos, sin = make_rotary_tables(S, D // n_head)

    out = block_sequence(x, pos_emb, pos_dist_emb, params, cos, sin, n_head)
    jax.block_until_ready(out)
    assert out.shape == (B, S, D) and out.dtype == dtype
    print("KERNEL_OK")
</pallas_src>

<mosaic_0001>
module attributes {stable_mosaic.version = 11 : i64} {
  func.func @_stack_kernel(%arg0: i32, %arg1: i32, %arg2: memref<1x8x32xbf16, #tpu.memory_space<vmem>>, %arg3: memref<1x8x32xbf16, #tpu.memory_space<vmem>>, %arg4: memref<8x4xf32, #tpu.memory_space<vmem>>, %arg5: memref<8x4xf32, #tpu.memory_space<vmem>>, %arg6: memref<1x32x96xbf16, #tpu.memory_space<vmem>>, %arg7: memref<1x1x96xbf16, #tpu.memory_space<vmem>>, %arg8: memref<1x3x96xbf16, #tpu.memory_space<vmem>>, %arg9: memref<1x1x96xbf16, #tpu.memory_space<vmem>>, %arg10: memref<1x32x32xbf16, #tpu.memory_space<vmem>>, %arg11: memref<1x1x32xbf16, #tpu.memory_space<vmem>>, %arg12: memref<1x1x32xbf16, #tpu.memory_space<vmem>>, %arg13: memref<1x1x32xbf16, #tpu.memory_space<vmem>>, %arg14: memref<1x32x64xbf16, #tpu.memory_space<vmem>>, %arg15: memref<1x64x32xbf16, #tpu.memory_space<vmem>>, %arg16: memref<1x8x32xbf16, #tpu.memory_space<vmem>>, %arg17: memref<8x32xbf16, #tpu.memory_space<vmem>>) attributes {dimension_semantics = [#tpu.dimension_semantics<parallel>, #tpu.dimension_semantics<arbitrary>], iteration_bounds = array<i64: 2, 2>, scalar_prefetch = 0 : i64, scratch_operands = 1 : i64, tpu.core_type = #tpu.core_type<tc>, window_params = [{transform_indices = @transform_0, window_bounds = array<i64: 1, 8, 32>}, {transform_indices = @transform_1, window_bounds = array<i64: 1, 8, 32>}, {pipeline_mode = #tpu.pipeline_mode<synchronous>, transform_indices = @transform_2, window_bounds = array<i64: 8, 4>}, {pipeline_mode = #tpu.pipeline_mode<synchronous>, transform_indices = @transform_3, window_bounds = array<i64: 8, 4>}, {transform_indices = @transform_4, window_bounds = array<i64: 1, 32, 96>}, {transform_indices = @transform_5, window_bounds = array<i64: 1, 1, 96>}, {transform_indices = @transform_6, window_bounds = array<i64: 1, 3, 96>}, {transform_indices = @transform_7, window_bounds = array<i64: 1, 1, 96>}, {transform_indices = @transform_8, window_bounds = array<i64: 1, 32, 32>}, {transform_indices = @transform_9, window_bounds = array<i64: 1, 1, 32>}, {transform_indices = @transform_10, window_bounds = array<i64: 1, 1, 32>}, {transform_indices = @transform_11, window_bounds = array<i64: 1, 1, 32>}, {transform_indices = @transform_12, window_bounds = array<i64: 1, 32, 64>}, {transform_indices = @transform_13, window_bounds = array<i64: 1, 64, 32>}, {transform_indices = @transform_14, window_bounds = array<i64: 1, 8, 32>}]} {
    %c0_i32 = arith.constant 0 : i32
    %0 = arith.cmpi eq, %arg1, %c0_i32 : i32
    %1 = arith.extui %0 : i1 to i32
    %c0_i32_0 = arith.constant 0 : i32
    %2 = arith.cmpi ne, %1, %c0_i32_0 : i32
    scf.if %2 {
      %c0_83 = arith.constant 0 : index
      %c0_84 = arith.constant 0 : index
      %c0_85 = arith.constant 0 : index
      %296 = vector.load %arg2[%c0_83, %c0_84, %c0_85] : memref<1x8x32xbf16, #tpu.memory_space<vmem>>, vector<1x8x32xbf16>
      %297 = vector.shape_cast %296 : vector<1x8x32xbf16> to vector<8x32xbf16>
      %c0_86 = arith.constant 0 : index
      %c0_87 = arith.constant 0 : index
      %298 = vector.load %arg17[%c0_86, %c0_87] : memref<8x32xbf16, #tpu.memory_space<vmem>>, vector<8x32xbf16>
      tpu.vector_store %arg17[%c0_86, %c0_87], %297 {strides = array<i32>} : memref<8x32xbf16, #tpu.memory_space<vmem>>, vector<8x32xbf16>,
    } else {
    }
    %c0 = arith.constant 0 : index
    %c0_1 = arith.constant 0 : index
    %3 = vector.load %arg17[%c0, %c0_1] : memref<8x32xbf16, #tpu.memory_space<vmem>>, vector<8x32xbf16>
    %c0_2 = arith.constant 0 : index
    %c0_3 = arith.constant 0 : index
    %c0_4 = arith.constant 0 : index
    %4 = vector.load %arg3[%c0_2, %c0_3, %c0_4] : memref<1x8x32xbf16, #tpu.memory_space<vmem>>, vector<1x8x32xbf16>
    %5 = vector.shape_cast %4 : vector<1x8x32xbf16> to vector<8x32xbf16>
    %6 = arith.addf %3, %5 : vector<8x32xbf16>
    %c0_5 = arith.constant 0 : index
    %c0_6 = arith.constant 0 : index
    %c0_7 = arith.constant 0 : index
    %7 = vector.load %arg6[%c0_5, %c0_6, %c0_7] : memref<1x32x96xbf16, #tpu.memory_space<vmem>>, vector<1x32x96xbf16>
    %8 = vector.shape_cast %7 : vector<1x32x96xbf16> to vector<32x96xbf16>
    %cst = arith.constant dense<0.000000e+00> : vector<8x96xf32>
    %9 = tpu.matmul %6, %8, %cst {dimension_numbers = #tpu.dot_dimension_numbers<[1], [0], [0], [1], [0, 0, 1, 1], [], []>} : vector<8x32xbf16>, vector<32x96xbf16>, vector<8x96xf32> -> vector<8x96xf32>
    %c0_8 = arith.constant 0 : index
    %c0_9 = arith.constant 0 : index
    %c0_10 = arith.constant 0 : index
    %10 = vector.load %arg7[%c0_8, %c0_9, %c0_10] : memref<1x1x96xbf16, #tpu.memory_space<vmem>>, vector<1x1x96xbf16>
    %11 = vector.shape_cast %10 : vector<1x1x96xbf16> to vector<1x96xbf16>
    %12 = arith.extf %11 : vector<1x96xbf16> to vector<1x96xf32>
    %13 = vector.broadcast %12 : vector<1x96xf32> to vector<8x96xf32>
    %14 = arith.addf %9, %13 : vector<8x96xf32>
    %c0_11 = arith.constant 0 : index
    %c0_12 = arith.constant 0 : index
    %c0_13 = arith.constant 0 : index
    %15 = vector.load %arg8[%c0_11, %c0_12, %c0_13] : memref<1x3x96xbf16, #tpu.memory_space<vmem>>, vector<1x3x96xbf16>
    %16 = vector.shape_cast %15 : vector<1x3x96xbf16> to vector<3x96xbf16>
    %17 = arith.extf %16 : vector<3x96xbf16> to vector<3x96xf32>
    %c0_14 = arith.constant 0 : index
    %c0_15 = arith.constant 0 : index
    %c0_16 = arith.constant 0 : index
    %18 = vector.load %arg9[%c0_14, %c0_15, %c0_16] : memref<1x1x96xbf16, #tpu.memory_space<vmem>>, vector<1x1x96xbf16>
    %19 = vector.shape_cast %18 : vector<1x1x96xbf16> to vector<1x96xbf16>
    %20 = arith.extf %19 : vector<1x96xbf16> to vector<1x96xf32>
    %cst_17 = arith.constant 0.000000e+00 : f32
    %21 = vector.broadcast %cst_17 : f32 to vector<1x96xf32>
    %cst_18 = arith.constant 0.000000e+00 : f32
    %22 = vector.broadcast %cst_18 : f32 to vector<2x96xf32>
    %23 = vector.extract_strided_slice %14 {offsets = [0, 0], sizes = [7, 96], strides = [1, 1]} : vector<8x96xf32> to vector<7x96xf32>
    %24 = tpu.concatenate %21, %23 in 0 : vector<1x96xf32>, vector<7x96xf32> -> vector<8x96xf32>
    %25 = vector.extract_strided_slice %14 {offsets = [0, 0], sizes = [6, 96], strides = [1, 1]} : vector<8x96xf32> to vector<6x96xf32>
    %26 = tpu.concatenate %22, %25 in 0 : vector<2x96xf32>, vector<6x96xf32> -> vector<8x96xf32>
    %27 = vector.extract_strided_slice %17 {offsets = [0, 0], sizes = [1, 96], strides = [1, 1]} : vector<3x96xf32> to vector<1x96xf32>
    %28 = vector.broadcast %27 : vector<1x96xf32> to vector<8x96xf32>
    %29 = arith.mulf %26, %28 : vector<8x96xf32>
    %30 = vector.extract_strided_slice %17 {offsets = [1, 0], sizes = [1, 96], strides = [1, 1]} : vector<3x96xf32> to vector<1x96xf32>
    %31 = vector.broadcast %30 : vector<1x96xf32> to vector<8x96xf32>
    %32 = arith.mulf %24, %31 : vector<8x96xf32>
    %33 = arith.addf %29, %32 : vector<8x96xf32>
    %34 = vector.extract_strided_slice %17 {offsets = [2, 0], sizes = [1, 96], strides = [1, 1]} : vector<3x96xf32> to vector<1x96xf32>
    %35 = vector.broadcast %34 : vector<1x96xf32> to vector<8x96xf32>
    %36 = arith.mulf %14, %35 : vector<8x96xf32>
    %37 = arith.addf %33, %36 : vector<8x96xf32>
    %38 = vector.broadcast %20 : vector<1x96xf32> to vector<8x96xf32>
    %39 = arith.addf %37, %38 : vector<8x96xf32>
    %40 = arith.truncf %39 : vector<8x96xf32> to vector<8x96xbf16>
    %c0_19 = arith.constant 0 : index
    %c0_20 = arith.constant 0 : index
    %41 = vector.load %arg4[%c0_19, %c0_20] : memref<8x4xf32, #tpu.memory_space<vmem>>, vector<8x4xf32>
    %c0_21 = arith.constant 0 : index
    %c0_22 = arith.constant 0 : index
    %42 = vector.load %arg5[%c0_21, %c0_22] : memref<8x4xf32, #tpu.memory_space<vmem>>, vector<8x4xf32>
    %43 = tpu.iota {dimensions = array<i32: 0>} : vector<8x8xi32>
    %44 = tpu.iota {dimensions = array<i32: 1>} : vector<8x8xi32>
    %45 = arith.cmpi sle, %44, %43 : vector<8x8xi32>
    %cst_23 = arith.constant 0.000000e+00 : f32
    %cst_24 = arith.constant -1.000000e+30 : f32
    %46 = vector.broadcast %cst_23 : f32 to vector<8x8xf32>
    %47 = vector.broadcast %cst_24 : f32 to vector<8x8xf32>
    %48 = arith.select %45, %46, %47 : vector<8x8xi1>, vector<8x8xf32>
    %c0_25 = arith.constant 0 : index
    %c0_26 = arith.constant 0 : index
    %c0_27 = arith.constant 0 : index
    %49 = vector.load %arg10[%c0_25, %c0_26, %c0_27] : memref<1x32x32xbf16, #tpu.memory_space<vmem>>, vector<1x32x32xbf16>
    %50 = vector.shape_cast %49 : vector<1x32x32xbf16> to vector<32x32xbf16>
    %cst_28 = arith.constant 0.000000e+00 : f32
    %51 = vector.broadcast %cst_28 : f32 to vector<8x32xf32>
    %52 = vector.extract_strided_slice %40 {offsets = [0, 0], sizes = [8, 8], strides = [1, 1]} : vector<8x96xbf16> to vector<8x8xbf16>
    %53 = arith.extf %52 : vector<8x8xbf16> to vector<8x8xf32>
    %54 = vector.extract_strided_slice %40 {offsets = [0, 32], sizes = [8, 8], strides = [1, 1]} : vector<8x96xbf16> to vector<8x8xbf16>
    %55 = arith.extf %54 : vector<8x8xbf16> to vector<8x8xf32>
    %56 = vector.extract_strided_slice %40 {offsets = [0, 64], sizes = [8, 8], strides = [1, 1]} : vector<8x96xbf16> to vector<8x8xbf16>
    %57 = vector.extract_strided_slice %53 {offsets = [0, 0], sizes = [8, 4], strides = [1, 1]} : vector<8x8xf32> to vector<8x4xf32>
    %58 = vector.extract_strided_slice %53 {offsets = [0, 4], sizes = [8, 4], strides = [1, 1]} : vector<8x8xf32> to vector<8x4xf32>
    %59 = vector.extract_strided_slice %55 {offsets = [0, 0], sizes = [8, 4], strides = [1, 1]} : vector<8x8xf32> to vector<8x4xf32>
    %60 = vector.extract_strided_slice %55 {offsets = [0, 4], sizes = [8, 4], strides = [1, 1]} : vector<8x8xf32> to vector<8x4xf32>
    %61 = arith.mulf %57, %41 : vector<8x4xf32>
    %62 = arith.mulf %58, %42 : vector<8x4xf32>
    %63 = arith.subf %61, %62 : vector<8x4xf32>
    %64 = arith.mulf %57, %42 : vector<8x4xf32>
    %65 = arith.mulf %58, %41 : vector<8x4xf32>
    %66 = arith.addf %64, %65 : vector<8x4xf32>
    %67 = tpu.concatenate %63, %66 in 1 : vector<8x4xf32>, vector<8x4xf32> -> vector<8x8xf32>
    %68 = arith.mulf %59, %41 : vector<8x4xf32>
    %69 = arith.mulf %60, %42 : vector<8x4xf32>
    %70 = arith.subf %68, %69 : vector<8x4xf32>
    %71 = arith.mulf %59, %42 : vector<8x4xf32>
    %72 = arith.mulf %60, %41 : vector<8x4xf32>
    %73 = arith.addf %71, %72 : vector<8x4xf32>
    %74 = tpu.concatenate %70, %73 in 1 : vector<8x4xf32>, vector<8x4xf32> -> vector<8x8xf32>
    %75 = arith.truncf %67 : vector<8x8xf32> to vector<8x8xbf16>
    %76 = arith.truncf %74 : vector<8x8xf32> to vector<8x8xbf16>
    %cst_29 = arith.constant dense<0.000000e+00> : vector<8x8xf32>
    %77 = tpu.matmul %75, %76, %cst_29 {dimension_numbers = #tpu.dot_dimension_numbers<[1], [1], [0], [0], [0, 0, 1, 0], [], []>} : vector<8x8xbf16>, vector<8x8xbf16>, vector<8x8xf32> -> vector<8x8xf32>
    %cst_30 = arith.constant 0.353553385 : f32
    %78 = vector.broadcast %cst_30 : f32 to vector<8x8xf32>
    %79 = arith.mulf %77, %78 : vector<8x8xf32>
    %80 = arith.addf %79, %48 : vector<8x8xf32>
    %cst_31 = arith.constant dense<0xFF800000> : vector<8xf32>
    %81 = vector.multi_reduction <maximumf>, %80, %cst_31 [1] : vector<8x8xf32> to vector<8xf32>
    %82 = vector.shape_cast %81 : vector<8xf32> to vector<8x1xf32>
    %83 = vector.broadcast %82 : vector<8x1xf32> to vector<8x8xf32>
    %84 = arith.subf %80, %83 : vector<8x8xf32>
    %85 = math.exp %84 : vector<8x8xf32>
    %cst_32 = arith.constant dense<0.000000e+00> : vector<8xf32>
    %86 = vector.multi_reduction <add>, %85, %cst_32 [1] : vector<8x8xf32> to vector<8xf32>
    %87 = vector.shape_cast %86 : vector<8xf32> to vector<8x1xf32>
    %88 = tpu.reciprocal %87 {approx = true} : vector<8x1xf32> -> vector<8x1xf32>
    %89 = vector.broadcast %88 : vector<8x1xf32> to vector<8x8xf32>
    %90 = arith.mulf %85, %89 : vector<8x8xf32>
    %91 = arith.truncf %90 : vector<8x8xf32> to vector<8x8xbf16>
    %cst_33 = arith.constant dense<0.000000e+00> : vector<8x8xf32>
    %92 = tpu.matmul %91, %56, %cst_33 {dimension_numbers = #tpu.dot_dimension_numbers<[1], [0], [0], [1], [0, 0, 1, 1], [], []>} : vector<8x8xbf16>, vector<8x8xbf16>, vector<8x8xf32> -> vector<8x8xf32>
    %93 = arith.truncf %92 : vector<8x8xf32> to vector<8x8xbf16>
    %94 = vector.extract_strided_slice %50 {offsets = [0, 0], sizes = [8, 32], strides = [1, 1]} : vector<32x32xbf16> to vector<8x32xbf16>
    %cst_34 = arith.constant dense<0.000000e+00> : vector<8x32xf32>
    %95 = tpu.matmul %93, %94, %cst_34 {dimension_numbers = #tpu.dot_dimension_numbers<[1], [0], [0], [1], [0, 0, 1, 1], [], []>} : vector<8x8xbf16>, vector<8x32xbf16>, vector<8x32xf32> -> vector<8x32xf32>
    %96 = arith.addf %51, %95 : vector<8x32xf32>
    %97 = vector.extract_strided_slice %40 {offsets = [0, 8], sizes = [8, 8], strides = [1, 1]} : vector<8x96xbf16> to vector<8x8xbf16>
    %98 = arith.extf %97 : vector<8x8xbf16> to vector<8x8xf32>
    %99 = vector.extract_strided_slice %40 {offsets = [0, 40], sizes = [8, 8], strides = [1, 1]} : vector<8x96xbf16> to vector<8x8xbf16>
    %100 = arith.extf %99 : vector<8x8xbf16> to vector<8x8xf32>
    %101 = vector.extract_strided_slice %40 {offsets = [0, 72], sizes = [8, 8], strides = [1, 1]} : vector<8x96xbf16> to vector<8x8xbf16>
    %102 = vector.extract_strided_slice %98 {offsets = [0, 0], sizes = [8, 4], strides = [1, 1]} : vector<8x8xf32> to vector<8x4xf32>
    %103 = vector.extract_strided_slice %98 {offsets = [0, 4], sizes = [8, 4], strides = [1, 1]} : vector<8x8xf32> to vector<8x4xf32>
    %104 = vector.extract_strided_slice %100 {offsets = [0, 0], sizes = [8, 4], strides = [1, 1]} : vector<8x8xf32> to vector<8x4xf32>
    %105 = vector.extract_strided_slice %100 {offsets = [0, 4], sizes = [8, 4], strides = [1, 1]} : vector<8x8xf32> to vector<8x4xf32>
    %106 = arith.mulf %102, %41 : vector<8x4xf32>
    %107 = arith.mulf %103, %42 : vector<8x4xf32>
    %108 = arith.subf %106, %107 : vector<8x4xf32>
    %109 = arith.mulf %102, %42 : vector<8x4xf32>
    %110 = arith.mulf %103, %41 : vector<8x4xf32>
    %111 = arith.addf %109, %110 : vector<8x4xf32>
    %112 = tpu.concatenate %108, %111 in 1 : vector<8x4xf32>, vector<8x4xf32> -> vector<8x8xf32>
    %113 = arith.mulf %104, %41 : vector<8x4xf32>
    %114 = arith.mulf %105, %42 : vector<8x4xf32>
    %115 = arith.subf %113, %114 : vector<8x4xf32>
    %116 = arith.mulf %104, %42 : vector<8x4xf32>
    %117 = arith.mulf %105, %41 : vector<8x4xf32>
    %118 = arith.addf %116, %117 : vector<8x4xf32>
    %119 = tpu.concatenate %115, %118 in 1 : vector<8x4xf32>, vector<8x4xf32> -> vector<8x8xf32>
    %120 = arith.truncf %112 : vector<8x8xf32> to vector<8x8xbf16>
    %121 = arith.truncf %119 : vector<8x8xf32> to vector<8x8xbf16>
    %cst_35 = arith.constant dense<0.000000e+00> : vector<8x8xf32>
    %122 = tpu.matmul %120, %121, %cst_35 {dimension_numbers = #tpu.dot_dimension_numbers<[1], [1], [0], [0], [0, 0, 1, 0], [], []>} : vector<8x8xbf16>, vector<8x8xbf16>, vector<8x8xf32> -> vector<8x8xf32>
    %cst_36 = arith.constant 0.353553385 : f32
    %123 = vector.broadcast %cst_36 : f32 to vector<8x8xf32>
    %124 = arith.mulf %122, %123 : vector<8x8xf32>
    %125 = arith.addf %124, %48 : vector<8x8xf32>
    %cst_37 = arith.constant dense<0xFF800000> : vector<8xf32>
    %126 = vector.multi_reduction <maximumf>, %125, %cst_37 [1] : vector<8x8xf32> to vector<8xf32>
    %127 = vector.shape_cast %126 : vector<8xf32> to vector<8x1xf32>
    %128 = vector.broadcast %127 : vector<8x1xf32> to vector<8x8xf32>
    %129 = arith.subf %125, %128 : vector<8x8xf32>
    %130 = math.exp %129 : vector<8x8xf32>
    %cst_38 = arith.constant dense<0.000000e+00> : vector<8xf32>
    %131 = vector.multi_reduction <add>, %130, %cst_38 [1] : vector<8x8xf32> to vector<8xf32>
    %132 = vector.shape_cast %131 : vector<8xf32> to vector<8x1xf32>
    %133 = tpu.reciprocal %132 {approx = true} : vector<8x1xf32> -> vector<8x1xf32>
    %134 = vector.broadcast %133 : vector<8x1xf32> to vector<8x8xf32>
    %135 = arith.mulf %130, %134 : vector<8x8xf32>
    %136 = arith.truncf %135 : vector<8x8xf32> to vector<8x8xbf16>
    %cst_39 = arith.constant dense<0.000000e+00> : vector<8x8xf32>
    %137 = tpu.matmul %136, %101, %cst_39 {dimension_numbers = #tpu.dot_dimension_numbers<[1], [0], [0], [1], [0, 0, 1, 1], [], []>} : vector<8x8xbf16>, vector<8x8xbf16>, vector<8x8xf32> -> vector<8x8xf32>
    %138 = arith.truncf %137 : vector<8x8xf32> to vector<8x8xbf16>
    %139 = vector.extract_strided_slice %50 {offsets = [8, 0], sizes = [8, 32], strides = [1, 1]} : vector<32x32xbf16> to vector<8x32xbf16>
    %cst_40 = arith.constant dense<0.000000e+00> : vector<8x32xf32>
    %140 = tpu.matmul %138, %139, %cst_40 {dimension_numbers = #tpu.dot_dimension_numbers<[1], [0], [0], [1], [0, 0, 1, 1], [], []>} : vector<8x8xbf16>, vector<8x32xbf16>, vector<8x32xf32> -> vector<8x32xf32>
    %141 = arith.addf %96, %140 : vector<8x32xf32>
    %142 = vector.extract_strided_slice %40 {offsets = [0, 16], sizes = [8, 8], strides = [1, 1]} : vector<8x96xbf16> to vector<8x8xbf16>
    %143 = arith.extf %142 : vector<8x8xbf16> to vector<8x8xf32>
    %144 = vector.extract_strided_slice %40 {offsets = [0, 48], sizes = [8, 8], strides = [1, 1]} : vector<8x96xbf16> to vector<8x8xbf16>
    %145 = arith.extf %144 : vector<8x8xbf16> to vector<8x8xf32>
    %146 = vector.extract_strided_slice %40 {offsets = [0, 80], sizes = [8, 8], strides = [1, 1]} : vector<8x96xbf16> to vector<8x8xbf16>
    %147 = vector.extract_strided_slice %143 {offsets = [0, 0], sizes = [8, 4], strides = [1, 1]} : vector<8x8xf32> to vector<8x4xf32>
    %148 = vector.extract_strided_slice %143 {offsets = [0, 4], sizes = [8, 4], strides = [1, 1]} : vector<8x8xf32> to vector<8x4xf32>
    %149 = vector.extract_strided_slice %145 {offsets = [0, 0], sizes = [8, 4], strides = [1, 1]} : vector<8x8xf32> to vector<8x4xf32>
    %150 = vector.extract_strided_slice %145 {offsets = [0, 4], sizes = [8, 4], strides = [1, 1]} : vector<8x8xf32> to vector<8x4xf32>
    %151 = arith.mulf %147, %41 : vector<8x4xf32>
    %152 = arith.mulf %148, %42 : vector<8x4xf32>
    %153 = arith.subf %151, %152 : vector<8x4xf32>
    %154 = arith.mulf %147, %42 : vector<8x4xf32>
    %155 = arith.mulf %148, %41 : vector<8x4xf32>
    %156 = arith.addf %154, %155 : vector<8x4xf32>
    %157 = tpu.concatenate %153, %156 in 1 : vector<8x4xf32>, vector<8x4xf32> -> vector<8x8xf32>
    %158 = arith.mulf %149, %41 : vector<8x4xf32>
    %159 = arith.mulf %150, %42 : vector<8x4xf32>
    %160 = arith.subf %158, %159 : vector<8x4xf32>
    %161 = arith.mulf %149, %42 : vector<8x4xf32>
    %162 = arith.mulf %150, %41 : vector<8x4xf32>
    %163 = arith.addf %161, %162 : vector<8x4xf32>
    %164 = tpu.concatenate %160, %163 in 1 : vector<8x4xf32>, vector<8x4xf32> -> vector<8x8xf32>
    %165 = arith.truncf %157 : vector<8x8xf32> to vector<8x8xbf16>
    %166 = arith.truncf %164 : vector<8x8xf32> to vector<8x8xbf16>
    %cst_41 = arith.constant dense<0.000000e+00> : vector<8x8xf32>
    %167 = tpu.matmul %165, %166, %cst_41 {dimension_numbers = #tpu.dot_dimension_numbers<[1], [1], [0], [0], [0, 0, 1, 0], [], []>} : vector<8x8xbf16>, vector<8x8xbf16>, vector<8x8xf32> -> vector<8x8xf32>
    %cst_42 = arith.constant 0.353553385 : f32
    %168 = vector.broadcast %cst_42 : f32 to vector<8x8xf32>
    %169 = arith.mulf %167, %168 : vector<8x8xf32>
    %170 = arith.addf %169, %48 : vector<8x8xf32>
    %cst_43 = arith.constant dense<0xFF800000> : vector<8xf32>
    %171 = vector.multi_reduction <maximumf>, %170, %cst_43 [1] : vector<8x8xf32> to vector<8xf32>
    %172 = vector.shape_cast %171 : vector<8xf32> to vector<8x1xf32>
    %173 = vector.broadcast %172 : vector<8x1xf32> to vector<8x8xf32>
    %174 = arith.subf %170, %173 : vector<8x8xf32>
    %175 = math.exp %174 : vector<8x8xf32>
    %cst_44 = arith.constant dense<0.000000e+00> : vector<8xf32>
    %176 = vector.multi_reduction <add>, %175, %cst_44 [1] : vector<8x8xf32> to vector<8xf32>
    %177 = vector.shape_cast %176 : vector<8xf32> to vector<8x1xf32>
    %178 = tpu.reciprocal %177 {approx = true} : vector<8x1xf32> -> vector<8x1xf32>
    %179 = vector.broadcast %178 : vector<8x1xf32> to vector<8x8xf32>
    %180 = arith.mulf %175, %179 : vector<8x8xf32>
    %181 = arith.truncf %180 : vector<8x8xf32> to vector<8x8xbf16>
    %cst_45 = arith.constant dense<0.000000e+00> : vector<8x8xf32>
    %182 = tpu.matmul %181, %146, %cst_45 {dimension_numbers = #tpu.dot_dimension_numbers<[1], [0], [0], [1], [0, 0, 1, 1], [], []>} : vector<8x8xbf16>, vector<8x8xbf16>, vector<8x8xf32> -> vector<8x8xf32>
    %183 = arith.truncf %182 : vector<8x8xf32> to vector<8x8xbf16>
    %184 = vector.extract_strided_slice %50 {offsets = [16, 0], sizes = [8, 32], strides = [1, 1]} : vector<32x32xbf16> to vector<8x32xbf16>
    %cst_46 = arith.constant dense<0.000000e+00> : vector<8x32xf32>
    %185 = tpu.matmul %183, %184, %cst_46 {dimension_numbers = #tpu.dot_dimension_numbers<[1], [0], [0], [1], [0, 0, 1, 1], [], []>} : vector<8x8xbf16>, vector<8x32xbf16>, vector<8x32xf32> -> vector<8x32xf32>
    %186 = arith.addf %141, %185 : vector<8x32xf32>
    %187 = vector.extract_strided_slice %40 {offsets = [0, 24], sizes = [8, 8], strides = [1, 1]} : vector<8x96xbf16> to vector<8x8xbf16>
    %188 = arith.extf %187 : vector<8x8xbf16> to vector<8x8xf32>
    %189 = vector.extract_strided_slice %40 {offsets = [0, 56], sizes = [8, 8], strides = [1, 1]} : vector<8x96xbf16> to vector<8x8xbf16>
    %190 = arith.extf %189 : vector<8x8xbf16> to vector<8x8xf32>
    %191 = vector.extract_strided_slice %40 {offsets = [0, 88], sizes = [8, 8], strides = [1, 1]} : vector<8x96xbf16> to vector<8x8xbf16>
    %192 = vector.extract_strided_slice %188 {offsets = [0, 0], sizes = [8, 4], strides = [1, 1]} : vector<8x8xf32> to vector<8x4xf32>
    %193 = vector.extract_strided_slice %188 {offsets = [0, 4], sizes = [8, 4], strides = [1, 1]} : vector<8x8xf32> to vector<8x4xf32>
    %194 = vector.extract_strided_slice %190 {offsets = [0, 0], sizes = [8, 4], strides = [1, 1]} : vector<8x8xf32> to vector<8x4xf32>
    %195 = vector.extract_strided_slice %190 {offsets = [0, 4], sizes = [8, 4], strides = [1, 1]} : vector<8x8xf32> to vector<8x4xf32>
    %196 = arith.mulf %192, %41 : vector<8x4xf32>
    %197 = arith.mulf %193, %42 : vector<8x4xf32>
    %198 = arith.subf %196, %197 : vector<8x4xf32>
    %199 = arith.mulf %192, %42 : vector<8x4xf32>
    %200 = arith.mulf %193, %41 : vector<8x4xf32>
    %201 = arith.addf %199, %200 : vector<8x4xf32>
    %202 = tpu.concatenate %198, %201 in 1 : vector<8x4xf32>, vector<8x4xf32> -> vector<8x8xf32>
    %203 = arith.mulf %194, %41 : vector<8x4xf32>
    %204 = arith.mulf %195, %42 : vector<8x4xf32>
    %205 = arith.subf %203, %204 : vector<8x4xf32>
    %206 = arith.mulf %194, %42 : vector<8x4xf32>
    %207 = arith.mulf %195, %41 : vector<8x4xf32>
    %208 = arith.addf %206, %207 : vector<8x4xf32>
    %209 = tpu.concatenate %205, %208 in 1 : vector<8x4xf32>, vector<8x4xf32> -> vector<8x8xf32>
    %210 = arith.truncf %202 : vector<8x8xf32> to vector<8x8xbf16>
    %211 = arith.truncf %209 : vector<8x8xf32> to vector<8x8xbf16>
    %cst_47 = arith.constant dense<0.000000e+00> : vector<8x8xf32>
    %212 = tpu.matmul %210, %211, %cst_47 {dimension_numbers = #tpu.dot_dimension_numbers<[1], [1], [0], [0], [0, 0, 1, 0], [], []>} : vector<8x8xbf16>, vector<8x8xbf16>, vector<8x8xf32> -> vector<8x8xf32>
    %cst_48 = arith.constant 0.353553385 : f32
    %213 = vector.broadcast %cst_48 : f32 to vector<8x8xf32>
    %214 = arith.mulf %212, %213 : vector<8x8xf32>
    %215 = arith.addf %214, %48 : vector<8x8xf32>
    %cst_49 = arith.constant dense<0xFF800000> : vector<8xf32>
    %216 = vector.multi_reduction <maximumf>, %215, %cst_49 [1] : vector<8x8xf32> to vector<8xf32>
    %217 = vector.shape_cast %216 : vector<8xf32> to vector<8x1xf32>
    %218 = vector.broadcast %217 : vector<8x1xf32> to vector<8x8xf32>
    %219 = arith.subf %215, %218 : vector<8x8xf32>
    %220 = math.exp %219 : vector<8x8xf32>
    %cst_50 = arith.constant dense<0.000000e+00> : vector<8xf32>
    %221 = vector.multi_reduction <add>, %220, %cst_50 [1] : vector<8x8xf32> to vector<8xf32>
    %222 = vector.shape_cast %221 : vector<8xf32> to vector<8x1xf32>
    %223 = tpu.reciprocal %222 {approx = true} : vector<8x1xf32> -> vector<8x1xf32>
    %224 = vector.broadcast %223 : vector<8x1xf32> to vector<8x8xf32>
    %225 = arith.mulf %220, %224 : vector<8x8xf32>
    %226 = arith.truncf %225 : vector<8x8xf32> to vector<8x8xbf16>
    %cst_51 = arith.constant dense<0.000000e+00> : vector<8x8xf32>
    %227 = tpu.matmul %226, %191, %cst_51 {dimension_numbers = #tpu.dot_dimension_numbers<[1], [0], [0], [1], [0, 0, 1, 1], [], []>} : vector<8x8xbf16>, vector<8x8xbf16>, vector<8x8xf32> -> vector<8x8xf32>
    %228 = arith.truncf %227 : vector<8x8xf32> to vector<8x8xbf16>
    %229 = vector.extract_strided_slice %50 {offsets = [24, 0], sizes = [8, 32], strides = [1, 1]} : vector<32x32xbf16> to vector<8x32xbf16>
    %cst_52 = arith.constant dense<0.000000e+00> : vector<8x32xf32>
    %230 = tpu.matmul %228, %229, %cst_52 {dimension_numbers = #tpu.dot_dimension_numbers<[1], [0], [0], [1], [0, 0, 1, 1], [], []>} : vector<8x8xbf16>, vector<8x32xbf16>, vector<8x32xf32> -> vector<8x32xf32>
    %231 = arith.addf %186, %230 : vector<8x32xf32>
    %232 = arith.extf %3 : vector<8x32xbf16> to vector<8x32xf32>
    %233 = arith.addf %232, %231 : vector<8x32xf32>
    %c0_53 = arith.constant 0 : index
    %c0_54 = arith.constant 0 : index
    %c0_55 = arith.constant 0 : index
    %234 = vector.load %arg11[%c0_53, %c0_54, %c0_55] : memref<1x1x32xbf16, #tpu.memory_space<vmem>>, vector<1x1x32xbf16>
    %235 = vector.shape_cast %234 : vector<1x1x32xbf16> to vector<1x32xbf16>
    %236 = arith.extf %235 : vector<1x32xbf16> to vector<1x32xf32>
    %237 = vector.broadcast %236 : vector<1x32xf32> to vector<8x32xf32>
    %238 = arith.addf %233, %237 : vector<8x32xf32>
    %cst_56 = arith.constant dense<0.000000e+00> : vector<8xf32>
    %239 = vector.multi_reduction <add>, %238, %cst_56 [1] : vector<8x32xf32> to vector<8xf32>
    %240 = vector.shape_cast %239 : vector<8xf32> to vector<8x1xf32>
    %cst_57 = arith.constant 3.200000e+01 : f32
    %241 = vector.broadcast %cst_57 : f32 to vector<8x1xf32>
    %242 = arith.divf %240, %241 : vector<8x1xf32>
    %243 = vector.broadcast %242 : vector<8x1xf32> to vector<8x32xf32>
    %244 = arith.subf %238, %243 : vector<8x32xf32>
    %245 = arith.mulf %244, %244 : vector<8x32xf32>
    %cst_58 = arith.constant dense<0.000000e+00> : vector<8xf32>
    %246 = vector.multi_reduction <add>, %245, %cst_58 [1] : vector<8x32xf32> to vector<8xf32>
    %247 = vector.shape_cast %246 : vector<8xf32> to vector<8x1xf32>
    %cst_59 = arith.constant 3.200000e+01 : f32
    %248 = vector.broadcast %cst_59 : f32 to vector<8x1xf32>
    %249 = arith.divf %247, %248 : vector<8x1xf32>
    %250 = vector.broadcast %242 : vector<8x1xf32> to vector<8x32xf32>
    %251 = arith.subf %238, %250 : vector<8x32xf32>
    %cst_60 = arith.constant 9.99999974E-6 : f32
    %252 = vector.broadcast %cst_60 : f32 to vector<8x1xf32>
    %253 = arith.addf %249, %252 : vector<8x1xf32>
    %254 = math.rsqrt %253 : vector<8x1xf32>
    %255 = vector.broadcast %254 : vector<8x1xf32> to vector<8x32xf32>
    %256 = arith.mulf %251, %255 : vector<8x32xf32>
    %c0_61 = arith.constant 0 : index
    %c0_62 = arith.constant 0 : index
    %c0_63 = arith.constant 0 : index
    %257 = vector.load %arg12[%c0_61, %c0_62, %c0_63] : memref<1x1x32xbf16, #tpu.memory_space<vmem>>, vector<1x1x32xbf16>
    %258 = vector.shape_cast %257 : vector<1x1x32xbf16> to vector<1x32xbf16>
    %259 = arith.extf %258 : vector<1x32xbf16> to vector<1x32xf32>
    %260 = vector.broadcast %259 : vector<1x32xf32> to vector<8x32xf32>
    %261 = arith.mulf %256, %260 : vector<8x32xf32>
    %c0_64 = arith.constant 0 : index
    %c0_65 = arith.constant 0 : index
    %c0_66 = arith.constant 0 : index
    %262 = vector.load %arg13[%c0_64, %c0_65, %c0_66] : memref<1x1x32xbf16, #tpu.memory_space<vmem>>, vector<1x1x32xbf16>
    %263 = vector.shape_cast %262 : vector<1x1x32xbf16> to vector<1x32xbf16>
    %264 = arith.extf %263 : vector<1x32xbf16> to vector<1x32xf32>
    %265 = vector.broadcast %264 : vector<1x32xf32> to vector<8x32xf32>
    %266 = arith.addf %261, %265 : vector<8x32xf32>
    %267 = arith.truncf %266 : vector<8x32xf32> to vector<8x32xbf16>
    %cst_67 = arith.constant 0.000000e+00 : f32
    %268 = vector.broadcast %cst_67 : f32 to vector<8x32xf32>
    %c0_68 = arith.constant 0 : index
    %c0_69 = arith.constant 0 : index
    %c0_70 = arith.constant 0 : index
    %269 = vector.load %arg14[%c0_68, %c0_69, %c0_70] : memref<1x32x64xbf16, #tpu.memory_space<vmem>>, vector<1x32x64xbf16>
    %270 = vector.shape_cast %269 : vector<1x32x64xbf16> to vector<32x64xbf16>
    %cst_71 = arith.constant dense<0.000000e+00> : vector<8x64xf32>
    %271 = tpu.matmul %267, %270, %cst_71 {dimension_numbers = #tpu.dot_dimension_numbers<[1], [0], [0], [1], [0, 0, 1, 1], [], []>} : vector<8x32xbf16>, vector<32x64xbf16>, vector<8x64xf32> -> vector<8x64xf32>
    %272 = arith.mulf %271, %271 : vector<8x64xf32>
    %273 = arith.mulf %271, %272 : vector<8x64xf32>
    %cst_72 = arith.constant 4.471500e-02 : f32
    %274 = vector.broadcast %cst_72 : f32 to vector<8x64xf32>
    %275 = arith.mulf %274, %273 : vector<8x64xf32>
    %276 = arith.addf %271, %275 : vector<8x64xf32>
    %cst_73 = arith.constant 0.797884583 : f32
    %277 = vector.broadcast %cst_73 : f32 to vector<8x64xf32>
    %278 = arith.mulf %277, %276 : vector<8x64xf32>
    %279 = math.tanh %278 : vector<8x64xf32>
    %cst_74 = arith.constant 1.000000e+00 : f32
    %280 = vector.broadcast %cst_74 : f32 to vector<8x64xf32>
    %281 = arith.addf %280, %279 : vector<8x64xf32>
    %cst_75 = arith.constant 5.000000e-01 : f32
    %282 = vector.broadcast %cst_75 : f32 to vector<8x64xf32>
    %283 = arith.mulf %282, %281 : vector<8x64xf32>
    %284 = arith.mulf %271, %283 : vector<8x64xf32>
    %285 = arith.truncf %284 : vector<8x64xf32> to vector<8x64xbf16>
    %c0_76 = arith.constant 0 : index
    %c0_77 = arith.constant 0 : index
    %c0_78 = arith.constant 0 : index
    %286 = vector.load %arg15[%c0_76, %c0_77, %c0_78] : memref<1x64x32xbf16, #tpu.memory_space<vmem>>, vector<1x64x32xbf16>
    %287 = vector.shape_cast %286 : vector<1x64x32xbf16> to vector<64x32xbf16>
    %cst_79 = arith.constant dense<0.000000e+00> : vector<8x32xf32>
    %288 = tpu.matmul %285, %287, %cst_79 {dimension_numbers = #tpu.dot_dimension_numbers<[1], [0], [0], [1], [0, 0, 1, 1], [], []>} : vector<8x64xbf16>, vector<64x32xbf16>, vector<8x32xf32> -> vector<8x32xf32>
    %289 = arith.addf %268, %288 : vector<8x32xf32>
    %290 = arith.addf %238, %289 : vector<8x32xf32>
    %291 = arith.truncf %290 : vector<8x32xf32> to vector<8x32xbf16>
    %c0_80 = arith.constant 0 : index
    %c0_81 = arith.constant 0 : index
    %292 = vector.load %arg17[%c0_80, %c0_81] : memref<8x32xbf16, #tpu.memory_space<vmem>>, vector<8x32xbf16>
    tpu.vector_store %arg17[%c0_80, %c0_81], %291 {strides = array<i32>} : memref<8x32xbf16, #tpu.memory_space<vmem>>, vector<8x32xbf16>,
    %c1_i32 = arith.constant 1 : i32
    %293 = arith.cmpi eq, %arg1, %c1_i32 : i32
    %294 = arith.extui %293 : i1 to i32
    %c0_i32_82 = arith.constant 0 : i32
    %295 = arith.cmpi ne, %294, %c0_i32_82 : i32
    scf.if %295 {
      %c0_83 = arith.constant 0 : index
      %c0_84 = arith.constant 0 : index
      %c0_85 = arith.constant 0 : index
      %296 = vector.load %arg16[%c0_83, %c0_84, %c0_85] : memref<1x8x32xbf16, #tpu.memory_space<vmem>>, vector<1x8x32xbf16>
      %297 = vector.shape_cast %296 : vector<1x8x32xbf16> to vector<8x32xbf16>
      %298 = vector.shape_cast %291 : vector<8x32xbf16> to vector<1x8x32xbf16>
      tpu.vector_store %arg16[%c0_83, %c0_84, %c0_85], %298 {strides = array<i32>} : memref<1x8x32xbf16, #tpu.memory_space<vmem>>, vector<1x8x32xbf16>,
    } else {
    }
    return
  }
  func.func @transform_0(%arg0: i32, %arg1: i32) -> (i32, i32, i32) {
    %c0_i32 = arith.constant 0 : i32
    %c0_i32_0 = arith.constant 0 : i32
    %c0_i32_1 = arith.constant 0 : i32
    return %arg0, %c0_i32, %c0_i32_0 : i32, i32, i32
  }
  func.func @transform_1(%arg0: i32, %arg1: i32) -> (i32, i32, i32) {
    %c0_i32 = arith.constant 0 : i32
    %c0_i32_0 = arith.constant 0 : i32
    %c0_i32_1 = arith.constant 0 : i32
    return %arg0, %c0_i32, %c0_i32_0 : i32, i32, i32
  }
  func.func @transform_2(%arg0: i32, %arg1: i32) -> (i32, i32) {
    %c0_i32 = arith.constant 0 : i32
    %c0_i32_0 = arith.constant 0 : i32
    %c0_i32_1 = arith.constant 0 : i32
    return %c0_i32, %c0_i32_0 : i32, i32
  }
  func.func @transform_3(%arg0: i32, %arg1: i32) -> (i32, i32) {
    %c0_i32 = arith.constant 0 : i32
    %c0_i32_0 = arith.constant 0 : i32
    %c0_i32_1 = arith.constant 0 : i32
    return %c0_i32, %c0_i32_0 : i32, i32
  }
  func.func @transform_4(%arg0: i32, %arg1: i32) -> (i32, i32, i32) {
    %c0_i32 = arith.constant 0 : i32
    %c0_i32_0 = arith.constant 0 : i32
    %c0_i32_1 = arith.constant 0 : i32
    return %arg1, %c0_i32, %c0_i32_0 : i32, i32, i32
  }
  func.func @transform_5(%arg0: i32, %arg1: i32) -> (i32, i32, i32) {
    %c0_i32 = arith.constant 0 : i32
    %c0_i32_0 = arith.constant 0 : i32
    %c0_i32_1 = arith.constant 0 : i32
    return %arg1, %c0_i32, %c0_i32_0 : i32, i32, i32
  }
  func.func @transform_6(%arg0: i32, %arg1: i32) -> (i32, i32, i32) {
    %c0_i32 = arith.constant 0 : i32
    %c0_i32_0 = arith.constant 0 : i32
    %c0_i32_1 = arith.constant 0 : i32
    return %arg1, %c0_i32, %c0_i32_0 : i32, i32, i32
  }
  func.func @transform_7(%arg0: i32, %arg1: i32) -> (i32, i32, i32) {
    %c0_i32 = arith.constant 0 : i32
    %c0_i32_0 = arith.constant 0 : i32
    %c0_i32_1 = arith.constant 0 : i32
    return %arg1, %c0_i32, %c0_i32_0 : i32, i32, i32
  }
  func.func @transform_8(%arg0: i32, %arg1: i32) -> (i32, i32, i32) {
    %c0_i32 = arith.constant 0 : i32
    %c0_i32_0 = arith.constant 0 : i32
    %c0_i32_1 = arith.constant 0 : i32
    return %arg1, %c0_i32, %c0_i32_0 : i32, i32, i32
  }
  func.func @transform_9(%arg0: i32, %arg1: i32) -> (i32, i32, i32) {
    %c0_i32 = arith.constant 0 : i32
    %c0_i32_0 = arith.constant 0 : i32
    %c0_i32_1 = arith.constant 0 : i32
    return %arg1, %c0_i32, %c0_i32_0 : i32, i32, i32
  }
  func.func @transform_10(%arg0: i32, %arg1: i32) -> (i32, i32, i32) {
    %c0_i32 = arith.constant 0 : i32
    %c0_i32_0 = arith.constant 0 : i32
    %c0_i32_1 = arith.constant 0 : i32
    return %arg1, %c0_i32, %c0_i32_0 : i32, i32, i32
  }
  func.func @transform_11(%arg0: i32, %arg1: i32) -> (i32, i32, i32) {
    %c0_i32 = arith.constant 0 : i32
    %c0_i32_0 = arith.constant 0 : i32
    %c0_i32_1 = arith.constant 0 : i32
    return %arg1, %c0_i32, %c0_i32_0 : i32, i32, i32
  }
  func.func @transform_12(%arg0: i32, %arg1: i32) -> (i32, i32, i32) {
    %c0_i32 = arith.constant 0 : i32
    %c0_i32_0 = arith.constant 0 : i32
    %c0_i32_1 = arith.constant 0 : i32
    return %arg1, %c0_i32, %c0_i32_0 : i32, i32, i32
  }
  func.func @transform_13(%arg0: i32, %arg1: i32) -> (i32, i32, i32) {
    %c0_i32 = arith.constant 0 : i32
    %c0_i32_0 = arith.constant 0 : i32
    %c0_i32_1 = arith.constant 0 : i32
    return %arg1, %c0_i32, %c0_i32_0 : i32, i32, i32
  }
  func.func @transform_14(%arg0: i32, %arg1: i32) -> (i32, i32, i32) {
    %c0_i32 = arith.constant 0 : i32
    %c0_i32_0 = arith.constant 0 : i32
    %c0_i32_1 = arith.constant 0 : i32
    return %arg0, %c0_i32, %c0_i32_0 : i32, i32, i32
  }
}

</mosaic_0001>

<bundles_post_ra>
// kernel: tpu_custom_call.1
= control target key start
LH: loop header
LB: loop body
LE: loop exit
PB: predicated region body
PF: predicated region fallthrough
CT: control target
= control target key end

     0   :  { %s3060_s0 = inlined_call_operand.vmem [shape: bf16[2,8,32], index: 0, kind: input, shape index: {}]   ;;  %s3061_s1 = inlined_call_operand.vmem [shape: bf16[2,8,32], index: 1, kind: input, shape index: {}]   ;;  %s3062_s2 = inlined_call_operand.vmem [shape: f32[8,4], index: 2, kind: input, shape index: {}]   ;;  %s3063_s3 = inlined_call_operand.vmem [shape: f32[8,4], index: 3, kind: input, shape index: {}]   ;;  %s3064_s4 = inlined_call_operand.vmem [shape: bf16[2,32,96], index: 4, kind: input, shape index: {}]   ;;  %s3065_s5 = inlined_call_operand.vmem [shape: bf16[2,1,96], index: 5, kind: input, shape index: {}]   ;;  %s3066_s6 = inlined_call_operand.vmem [shape: bf16[2,3,96], index: 6, kind: input, shape index: {}]   ;;  %s3067_s7 = inlined_call_operand.vmem [shape: bf16[2,1,96], index: 7, kind: input, shape index: {}]   ;;  %s3068_s8 = inlined_call_operand.vmem [shape: bf16[2,32,32], index: 8, kind: input, shape index: {}]   ;;  %s3069_s9 = inlined_call_operand.vmem [shape: bf16[2,1,32], index: 9, kind: input, shape index: {}]   ;;  %s3070_s10 = inlined_call_operand.vmem [shape: bf16[2,1,32], index: 10, kind: input, shape index: {}]   ;;  %s3071_s11 = inlined_call_operand.vmem [shape: bf16[2,1,32], index: 11, kind: input, shape index: {}]   ;;  %s3072_s12 = inlined_call_operand.vmem [shape: bf16[2,32,64], index: 12, kind: input, shape index: {}]   ;;  %s3073_s13 = inlined_call_operand.vmem [shape: bf16[2,64,32], index: 13, kind: input, shape index: {}]   ;;  %s3074_s14 = inlined_call_operand.hbm [shape: bf16[2,8,32], index: 14, kind: output, shape index: {}]  }
   0x1   :  { %3090 = sst [smem:[#allocation19_spill]] %s3060_s0 }
   0x2   :  { %3091 = sst [smem:[#allocation20_spill]] %s3061_s1 }
   0x3   :  { %3092 = sst [smem:[#allocation21_spill]] %s3062_s2 }
   0x4   :  { %3093 = sst [smem:[#allocation22_spill]] %s3063_s3 }
   0x5   :  { %3094 = sst [smem:[#allocation23_spill]] %s3064_s4 }
   0x6   :  { %3095 = sst [smem:[#allocation24_spill]] %s3066_s6 }
   0x7   :  { %3096 = sst [smem:[#allocation25_spill]] %s3068_s8 }
   0x8   :  { %3097 = sst [smem:[#allocation26_spill]] %s3074_s14 }
   0x9   :  { %19 = vsyncpa [#allocation4], 0 }
   0xa   :  { %21 = vsyncpa [#allocation4 + $0x1], 0  ;;  %s2604_s29 = smov 0   ;;  %s2606_s30 = smov 0  }
   0xb   :  { %s2608_s15 = smov 0   ;;  %s2610_s16 = smov 0  }
   0xc   :  { %s2612_s17 = smov 0   ;;  %s2614_s18 = smov 0  }
   0xd   :  { %s2616_s19 = smov 0   ;;  %s2618_s20 = smov 0  }
   0xe LB: > { %3098 = sst [smem:[#allocation6_spill]] %s2465_s29  ;;  %s2084_s21 = sadd.s32 4294967295, %s2493_s20   ;;  %s2493_s20 = sphi %s2618_s20, %s27_s20   ;;  %s2489_s19 = sphi %s2616_s19, %s3138_s19   ;;  %s2485_s18 = sphi %s2614_s18, %s3137_s18   ;;  %s2481_s17 = sphi %s2612_s17, %s3136_s17   ;;  %s2477_s16 = sphi %s2610_s16, %s3135_s16   ;;  %s2473_s15 = sphi %s2608_s15, %s3134_s15   ;;  %s2469_s30 = sphi %s2606_s30, %s3133_s30   ;;  %s2465_s29 = sphi %s2604_s29, %s3132_s29  }
   0xf   : > { %3099 = sst [smem:[#allocation7_spill]] %s2469_s30  ;;  %s2085_s22 = sadd.s32 4294967294, %s2493_s20  }
  0x10   : > { %3100 = sst [smem:[#allocation8_spill]] %s2473_s15  ;;  %s36_s23 = sadd.s32 1, %s2485_s18 }
  0x11   : > { %3101 = sst [smem:[#allocation9_spill]] %s2477_s16  ;;  %p37_p0 = scmp.ge.s32.totalorder %s36_s23, 2 }
  0x12   : > { %3102 = sst [smem:[#allocation10_spill]] %s2481_s17  ;;  %s39_s24 = sadd.s32 1, %s2489_s19 }
  0x13   : > { %3103 = sst [smem:[#allocation11_spill]] %s2485_s18  ;;  %p410_p1 = scmp.ne.s32.totalorder %s2473_s15, %s2469_s30 }
  0x14   : > { %3104 = sst [smem:[#allocation12_spill]] %s2489_s19  ;;  %p411_p2 = scmp.eq.s32.totalorder %s2084_s21, 3 }
  0x15   : > { %3105 = sst [smem:[#allocation13_spill]] %s2493_s20  ;;  %s3140_s23 = smov (%p37_p0, %s36_s23), 0 }
  0x16   : > { %3106 = sst [smem:[#allocation14_spill]] %s3140_s23  ;;  %s3142_s24 = smov (!%p37_p0, %s39_s24), %s2489_s19 }
  0x17   : > { %p2653_p3 = por %p411_p2, %p410_p1  ;;  %p416_p4 = scmp.ne.s32.totalorder %s2469_s30, %s2465_s29 }
  0x18   : > { %p41_p5 = scmp.ge.s32.totalorder %s3142_s24, 2  ;;  %p417_p6 = scmp.eq.s32.totalorder %s2085_s22, 3 }
  0x19   : > { %s3107_s25 = scalar_select %p2653_p3, 1, 0 }
  0x1a   : > { %p2088_p7 = scmp.ge.s32.totalorder %s2493_s20, 1  ;;  %p524_p8 = scmp.lt.s32.totalorder %s2493_s20, 5 }
  0x1b   : > { %3108 = sst [smem:[#allocation15_spill]] %s3107_s25  ;;  %s3144_s24 = smov (%p41_p5, %s3142_s24), 0 }
  0x1c   : > { %3109 = sst [smem:[#allocation16_spill]] %s3144_s24  ;;  %p2663_p9 = por %p417_p6, %p416_p4 }
  0x1d   : > { %p525_p10 = pnand %p2088_p7, %p524_p8  ;;  %s397_s27 = ssub.s32 %s2489_s19, %s3144_s24 }
  0x1e   : > { %s3110_s26 = scalar_select %p2663_p9, 1, 0 }
  0x1f   : > { %s400_s28 = sadd.s32 1, %s2473_s15  ;;  %p398_p11 = scmp.eq.s32.totalorder %s397_s27, 0 }
  0x20   : > { %3111 = sst [smem:[#allocation17_spill]] %s3110_s26  ;;  %528 = sbr.rel (%p525_p10) target bundleno = 3464 (0xd88), region = 76 }
  0x21   : > { %s2671_s21 = scalar_select %p398_p11, %s2473_s15, %s400_s28  }
  0x22   : > { %s3079_s22 = sand.u32 (!%p525_p10), 1, %s2469_s30   ;;  %p612_p12 = scmp.lt.s32.totalorder (!%p525_p10), %s2481_s17, 1 }
  0x23   : > { %3112 = sst [smem:[#allocation18_spill]] %s2671_s21  ;;  %s2677_s23 = sshll.u32 (!%p525_p10), %s3079_s22, 2 }
  0x24   : > { %p620_p13 = scmp.lt.s32.totalorder (!%p525_p10), %s2477_s16, 1  ;;  %s3113_s0 = sld [smem:[#allocation19_spill]] (!%p525_p10) }
  0x25   : > { %s613_s18 = scalar_select %p612_p12, %s2481_s17, 1 }
  0x26   : > { %s2682_s26 = scalar_select %p620_p13, %s2477_s16, 1 }
  0x27   : > { %s2090_s27 = sshll.u32 %s613_s18, 2  ;;  %s3114_s1 = sld [smem:[#allocation20_spill]] }
  0x28   : > { %s2130_s29 = sshll.u32 %s2682_s26, 4  ;;  %s3115_s4 = sld [smem:[#allocation23_spill]] }
  0x29   : > { %s2094_s3 = sshll.u32 %s2682_s26, 1  ;;  %s3116_s6 = sld [smem:[#allocation24_spill]] }
  0x2a   : > { %s615_s19 = scalar_lea.vmem %s3113_s0, %s2090_s27  ;;  %s3117_s8 = sld [smem:[#allocation25_spill]] }
  0x2b   : > { %s642_s30 = scalar_lea.vmem %s3069_s9, %s2682_s26  ;;  %s648_s18 = scalar_lea.vmem %s3071_s11, %s2682_s26 }
  0x2c   : > { %s2728_s28 = scalar_lea.vmem %s3072_s12, %s2130_s29  ;;  %s2133_s22 = sshll.u32 %s2682_s26, 5 }
  0x2d   : > { %s619_s15 = scalar_lea.vmem %s3114_s1, %s2090_s27  ;;  %s611_s14 = scalar_lea.vmem [#allocation3], %s2677_s23 }
  0x2e   : > { %s624_s2 = scalar_lea.vmem %s3115_s4, %s2130_s29  ;;  %s645_s4 = scalar_lea.vmem %s3070_s10, %s2682_s26 }
  0x2f   : > { %s2702_s24 = scalar_lea.vmem %s3116_s6, %s2094_s3  ;;  %s3118_s20 = sld [smem:[#allocation9_spill]] }
  0x30   : > { %s2711_s1 = scalar_lea.vmem %s3117_s8, %s2130_s29  ;;  %s2734_s8 = scalar_lea.vmem %s3073_s13, %s2133_s22 }
  0x35   : > { %p2101_p0 = scmp.ne.s32.totalorder %s3118_s20, 0 }
  0x37   : > { %663 = sbr.rel (%p2101_p0) target bundleno = 62 (0x3e), region = 80 }
  0x3c   : > { %v664_v0 = vld [vmem:[%s615_s19] sm:$0xf]  ;;  %vm665_vm0 = vcmask 257024  }
  0x3d   : > { %666 = vst.msk [vmem:[#allocation2] sm:$0xf] %vm665_vm0, %v664_v0 }
  0x3e PF: > { %v2373_v1 = vld [vmem:[%s624_s2 + $0x8] sm:$0xff]   ;;  %v2495_v2 = vmov 0.0   ;;  %v2374_v3 = vld [vmem:[%s624_s2] sm:$0xff]   ;;  %vm2496_vm1 = vmmov 0   ;;  %s3119_s19 = sld [smem:[#allocation22_spill]]  ;;  %s2497_s17 = smov 36   ;;  %v676_v9 = vlaneseq }
  0x3f   : > { %2169 = vmatprep.subr.bf16.mxu1 %v2495_v2  ;;  %2183 = vmatprep.subr.bf16.mxu0 %v2495_v2  ;;  %v668_v5 = vld [vmem:[%s619_s15] sm:$0xf]  ;;  %s3120_s2 = sld [smem:[#allocation21_spill]]  ;;  %s2498_s16 = smov 4   ;;  %vm692_vm2 = vcmask 261120   ;;  %vm743_vm3 = vcmask 1040384  }
  0x40   : > { %2170 = vmatpush3.bf16.msra.mxu1 %v2373_v1  ;;  %2173 = vmatprep.mubr.msk.bf16.mxu1 %vm2496_vm1, %v2495_v2  ;;  %s2499_s15 = smov 44   ;;  %s2500_s3 = smov 12   ;;  %v2777_v10 = vshrl.u32 %v676_v9, 7  ;;  %v736_v15 = vld [vmem:[%s2702_s24] sm:$0x3]  ;;  %vm747_vm4 = vcmask 1041408  }
  0x41   : > { %2171 = vmatprep.subr.bf16.mxu1 %v2495_v2  ;;  %2185 = vmatprep.mubr.msk.bf16.mxu0 %vm2496_vm1, %v2495_v2  ;;  %s2501_s0 = smov 32   ;;  %s2502_s22 = smov 40   ;;  %v737_v18 = vunpack.c.l.bf16 %v736_v15  ;;  %vm811_vm5 = vcmask 31744   ;;  %vm850_vm6 = vcmask 64512   ;;  %vm917_vm8 = vcmask 1043456  }
  0x42   : > { %s3121_s6 = scalar_lea.vmem %s3065_s5, %s2682_s26  ;;  %v2785_v13 = vsub.s32 0, %v2777_v10  ;;  %v756_v16 = vsub.s32 1, %v2777_v10  ;;  %v762_v19 = vsub.s32 2, %v2777_v10  ;;  %s3122_s25 = scalar_lea.vmem %s3067_s7, %s2682_s26  ;;  %vm1830_vm9 = vcmask 523264  }
  0x43   : > { %v674_v11 = vld [vmem:[%s3121_s6] sm:$0x1]  ;;  %s2503_s24 = smov 124   ;;  %s2504_s21 = smov 8   ;;  %vm1876_vm10 = vcmask 257024  }
  0x44   : > { %v2742_v4 = vld [vmem:[#allocation2] sm:$0xf]  ;;  %2172 = vmatpush3.bf16.msra.mxu1 %v2374_v3  ;;  %v675_v12 = vunpack.c.l.bf16 %v674_v11  ;;  %v752_v22 = vrot.slane %v737_v18, %v2785_v13  ;;  %v757_v23 = vrot.slane %v737_v18, %v756_v16  ;;  %v763_v28 = vrot.slane %v737_v18, %v762_v19  ;;  %s2512_s27 = smov 56   ;;  %s2513_s20 = smov 52  }
  0x45   : > { %v2747_v6 = vld [vmem:[%s3119_s19] sm:$0xff]  ;;  %v669_v8 = vadd.bf16 %v668_v5, %v2742_v4  ;;  %2177 = vmatprep.subr.bf16.mxu1 %v2495_v2  ;;  %s2514_s6 = smov 20   ;;  %s2515_s29 = smov 48  }
  0x46   : > { %v2753_v7 = vld [vmem:[%s3120_s2] sm:$0xff]  ;;  %817 = vrot.lane.b32.xlu0 %v2747_v6, %s2497_s17  ;;  %v679_v14 = vrot.slane %v675_v12, %v2785_v13  ;;  %s2505_s2 = smov 96   ;;  %s2516_s19 = smov 16  }
  0x47   : > { %798 = vrot.lane.b32.xlu1 %v2753_v7, %s2498_s16  ;;  %2174 = vmatmul.mubr.msk.bf16.vlgmr.msra.gmra.mxu1 %vm692_vm2, %v669_v8  ;;  %v738_v21 = vld [vmem:[%s3122_s25] sm:$0x1]  ;;  %s2517_s25 = smov 84  }
  0x48   : > { %2179 = vmatprep.mubr.msk.bf16.mxu1 %vm2496_vm1, %v2495_v2  ;;  %v739_v27 = vunpack.c.l.bf16 %v738_v21 }
  0x4a   : > { %830 = vrot.lane.b32.xlu0 %v2753_v7, %s2497_s17  ;;  %v769_v37 = vrot.slane %v739_v27, %v2785_v13  ;;  %s2506_s17 = smov 100  }
  0x4b   : > { %1001 = vrot.lane.b32.xlu1 %v2747_v6, %s2499_s15 }
  0x4e   : > { %1014 = vrot.lane.b32.xlu0 %v2753_v7, %s2499_s15  ;;  %s2507_s15 = smov 92  }
  0x4f   : > { %966 = vrot.lane.b32.xlu1 %v2747_v6, %s2500_s3 }
  0x52   : > { %979 = vrot.lane.b32.xlu0 %v2753_v7, %s2500_s3  ;;  %s2508_s3 = smov 88  }
  0x53   : > { %813 = vrot.lane.b32.xlu1 %v2753_v7, %s2501_s0 }
  0x56   : > { %826 = vrot.lane.b32.xlu0 %v2747_v6, %s2501_s0  ;;  %s2511_s0 = smov 64  }
  0x57   : > { %787 = vrot.lane.b32.xlu1 %v2747_v6, %s2498_s16 }
  0x5a   : > { %997 = vrot.lane.b32.xlu0 %v2753_v7, %s2502_s22 }
  0xb8   : > { %v818_v39 = vpop.permute.xlu0 %817 }
  0xb9   : > { %v799_v46 = vpop.permute.xlu1 %798 }
  0xbc   : > { %v831_v43 = vpop.permute.xlu0 %830 }
  0xbd   : > { %v1002_v48 = vpop.permute.xlu1 %1001 }
  0xc0   : > { %v1015_v49 = vpop.permute.xlu0 %1014 }
  0xc1   : > { %v967_v52 = vpop.permute.xlu1 %966 }
  0xc4   : > { %v980_v53 = vpop.permute.xlu0 %979 }
  0xc5   : > { %v814_v56 = vpop.permute.xlu1 %813 }
  0xc8   : > { %v827_v57 = vpop.permute.xlu0 %826 }
  0xc9   : > { %v788_v58 = vpop.permute.xlu1 %787 }
  0xcc   : > { %v998_v59 = vpop.permute.xlu0 %997 }
 0x107   : > { %v730_v17 = vpop.f32.mrf.mxu1 }
 0x108   : > { %v731_v20 = vadd.f32 %v730_v17, %v679_v14 }
 0x109   : > { %v2175_v24 = vpop.f32.mrf.mxu1 }
 0x10a   : > { %v741_v25 = vrot.slane %v731_v20, 7  ;;  %v745_v26 = vrot.slane %v731_v20, 6  ;;  %v764_v36 = vmul.f32 %v763_v28, %v731_v20 }
 0x10b   : > { %v733_v29 = vpop.f32.mrf.mxu1 }
 0x10c   : > { %v744_v30 = vsel %vm743_vm3, 0.0, %v741_v25  ;;  %v748_v31 = vsel %vm747_vm4, 0.0, %v745_v26 }
 0x10d   : > { %v753_v32 = vmul.f32 %v752_v22, %v748_v31  ;;  %v758_v33 = vmul.f32 %v757_v23, %v744_v30  ;;  %v2176_v34 = vpop.f32.mrf.mxu1 }
 0x10f   : > { %v759_v35 = vadd.f32 %v758_v33, %v753_v32 }
 0x111   : > { %v765_v38 = vadd.f32 %v764_v36, %v759_v35 }
 0x113   : > { %v770_v40 = vadd.f32 %v769_v37, %v765_v38 }
 0x115   : > { %v2798_v41 = vpack.c.bf16 %v770_v40, %v770_v40 }
 0x117   : > { %v2801_v42 = vunpack.c.l.bf16 %v2798_v41 }
 0x119   : > { %v820_v44 = vmul.f32 %v818_v39, %v2801_v42  ;;  %v833_v45 = vmul.f32 %v831_v43, %v2801_v42  ;;  %v801_v47 = vmul.f32 %v799_v46, %v2801_v42  ;;  %v1004_v50 = vmul.f32 %v1002_v48, %v2801_v42 }
 0x11a   : > { %v1017_v51 = vmul.f32 %v1015_v49, %v2801_v42  ;;  %v969_v54 = vmul.f32 %v967_v52, %v2801_v42  ;;  %v982_v55 = vmul.f32 %v980_v53, %v2801_v42  ;;  %v816_v60 = vmul.f32 %v814_v56, %v2801_v42 }
 0x11b   : > { %835 = vrot.lane.b32.xlu0 %v833_v45, %s2503_s24  ;;  %822 = vrot.lane.b32.xlu1 %v820_v44, %s2503_s24  ;;  %v829_v61 = vmul.f32 %v827_v57, %v2801_v42  ;;  %v796_v3 = vmul.f32 %v2801_v42, %v2747_v6  ;;  %v790_v11 = vmul.f32 %v788_v58, %v2801_v42  ;;  %v2510_v52 = vmov -1e+30  }
 0x11c   : > { %v1000_v14 = vmul.f32 %v998_v59, %v2801_v42  ;;  %v785_v32 = vmul.f32 %v2801_v42, %v2753_v7 }
 0x11f   : > { %1010 = vrot.lane.b32.xlu1 %v2747_v6, %s2502_s22  ;;  %803 = vrot.lane.b32.xlu0 %v801_v47, %s2503_s24 }
 0x123   : > { %1006 = vrot.lane.b32.xlu1 %v1004_v50, %s2503_s24  ;;  %1019 = vrot.lane.b32.xlu0 %v1017_v51, %s2503_s24  ;;  %v777_v50 = vand.u32 127, %v676_v9 }
 0x125   : > { %vm778_vm7 = vcmp.le.s32.totalorder %v777_v50, %v2777_v10 }
 0x126   : > { %v2851_v53 = vsel %vm778_vm7, 0.0, %v2510_v52 }
 0x127   : > { %962 = vrot.lane.b32.xlu1 %v2753_v7, %s2504_s21  ;;  %975 = vrot.lane.b32.xlu0 %v2747_v6, %s2504_s21  ;;  %s2518_s21 = smov 80  }
 0x12b   : > { %971 = vrot.lane.b32.xlu1 %v969_v54, %s2503_s24  ;;  %984 = vrot.lane.b32.xlu0 %v982_v55, %s2503_s24 }
 0x18d   : > { %v836_v62 = vpop.permute.xlu0 %835  ;;  %v823_v63 = vpop.permute.xlu1 %822 }
 0x18e   : > { %v838_v0 = vadd.f32 %v836_v62, %v829_v61  ;;  %v825_v1 = vsub.f32 %v816_v60, %v823_v63 }
 0x190   : > { %840 = vrot.lane.b32.xlu1 %v825_v1, %s2505_s2  ;;  %844 = vrot.lane.b32.xlu0 %v838_v0, %s2506_s17  ;;  %s2519_s2 = smov 116   ;;  %s2520_s17 = smov 60  }
 0x191   : > { %v1011_v5 = vpop.permute.xlu1 %1010  ;;  %v804_v8 = vpop.permute.xlu0 %803 }
 0x192   : > { %v806_v12 = vadd.f32 %v804_v8, %v796_v3  ;;  %v1013_v15 = vmul.f32 %v1011_v5, %v2801_v42 }
 0x194   : > { %808 = vrot.lane.b32.xlu0 %v806_v12, %s2498_s16  ;;  %792 = vrot.lane.b32.xlu1 %v790_v11, %s2503_s24  ;;  %s2509_s16 = smov 120  }
 0x195   : > { %v1007_v16 = vpop.permute.xlu1 %1006  ;;  %v1020_v17 = vpop.permute.xlu0 %1019 }
 0x196   : > { %v1009_v18 = vsub.f32 %v1000_v14, %v1007_v16  ;;  %v1022_v19 = vadd.f32 %v1020_v17, %v1013_v15 }
 0x198   : > { %1028 = vrot.lane.b32.xlu0 %v1022_v19, %s2507_s15  ;;  %1024 = vrot.lane.b32.xlu1 %v1009_v18, %s2508_s3  ;;  %s2521_s15 = smov 112   ;;  %s2522_s3 = smov 28  }
 0x199   : > { %v963_v20 = vpop.permute.xlu1 %962  ;;  %v976_v21 = vpop.permute.xlu0 %975 }
 0x19a   : > { %v965_v22 = vmul.f32 %v963_v20, %v2801_v42  ;;  %v978_v23 = vmul.f32 %v976_v21, %v2801_v42 }
 0x19d   : > { %v972_v24 = vpop.permute.xlu1 %971  ;;  %v985_v25 = vpop.permute.xlu0 %984 }
 0x19e   : > { %v974_v26 = vsub.f32 %v965_v22, %v972_v24  ;;  %v987_v27 = vadd.f32 %v985_v25, %v978_v23 }
 0x1a0   : > { %993 = vrot.lane.b32.xlu0 %v987_v27, %s2503_s24  ;;  %989 = vrot.lane.b32.xlu1 %v974_v26, %s2509_s16  ;;  %s2523_s16 = smov 24  }
 0x202   : > { %v841_v28 = vpop.permute.xlu1 %840  ;;  %v845_v29 = vpop.permute.xlu0 %844 }
 0x203   : > { %v847_v30 = vsel %vm811_vm5, %v841_v28, %v845_v29 }
 0x204   : > { %v849_v31 = vpack.c.bf16 %v847_v30, %v847_v30 }
 0x206   : > { %v809_v33 = vpop.permute.xlu0 %808  ;;  %v793_v34 = vpop.permute.xlu1 %792  ;;  %v855_v35 = vsel %vm850_vm6, %v849_v31, 0 }
 0x207   : > { %v795_v36 = vsub.f32 %v785_v32, %v793_v34  ;;  %2178 = vmatpush3.bf16.xpose.msra.mxu1 %v855_v35 }
 0x208   : > { %2189 = vmatprep.subr.bf16.mxu1 %v2495_v2 }
 0x209   : > { %v812_v37 = vsel %vm811_vm5, %v795_v36, %v809_v33 }
 0x20a   : > { %v1029_v38 = vpop.permute.xlu0 %1028  ;;  %v1025_v39 = vpop.permute.xlu1 %1024  ;;  %v848_v43 = vpack.c.bf16 %v812_v37, %v812_v37 }
 0x20b   : > { %v1031_v40 = vsel %vm811_vm5, %v1025_v39, %v1029_v38  ;;  %v780_v38 = vld [vmem:[%s2711_s1] sm:$0xf] }
 0x20c   : > { %v1033_v44 = vpack.c.bf16 %v1031_v40, %v1031_v40  ;;  %v1193_v39 = vsel %vm917_vm8, %v780_v38, 0  ;;  %v781_v40 = vld [vmem:[%s2711_s1 + $0x4] sm:$0xf] }
 0x20e   : > { %2180 = vmatmul.mubr.msk.bf16.vlgmr.msra.gmra.mxu1 %vm850_vm6, %v848_v43  ;;  %v1038_v45 = vsel %vm850_vm6, %v1033_v44, 0  ;;  %v1147_v43 = vsel %vm917_vm8, %v781_v40, 0 }
 0x20f   : > { %2190 = vmatpush3.bf16.xpose.msra.mxu1 %v1038_v45  ;;  %2191 = vmatprep.mubr.msk.bf16.mxu1 %vm2496_vm1, %v2495_v2 }
 0x210   : > { %2201 = vmatprep.subr.bf16.mxu1 %v2495_v2 }
 0x212   : > { %v994_v46 = vpop.permute.xlu0 %993  ;;  %v990_v47 = vpop.permute.xlu1 %989 }
 0x213   : > { %v996_v48 = vsel %vm811_vm5, %v990_v47, %v994_v46 }
 0x214   : > { %v1032_v49 = vpack.c.bf16 %v996_v48, %v996_v48 }
 0x216   : > { %2192 = vmatmul.mubr.msk.bf16.vlgmr.msra.gmra.mxu1 %vm850_vm6, %v1032_v49 }
 0x217   : > { %2203 = vmatprep.mubr.msk.bf16.mxu1 %vm2496_vm1, %v2495_v2  ;;  %2202 = vmatpush3.bf16.msra.mxu1 %v1147_v43 }
 0x218   : > { %2213 = vmatprep.subr.bf16.mxu1 %v2495_v2 }
 0x2ce   : > { %v891_v51 = vpop.f32.mrf.mxu1 }
 0x2cf   : > { %v897_v54 = vmul.f32 0.35355338, %v891_v51 }
 0x2d0   : > { %v2181_v55 = vpop.f32.mrf.mxu1 }
 0x2d1   : > { %v898_v56 = vadd.f32 %v897_v54, %v2851_v53 }
 0x2d2   : > { %v894_v57 = vpop.f32.mrf.mxu1 }
 0x2d3   : > { %v899_v58 = vsel %vm850_vm6, %v898_v56, -inf }
 0x2d4   : > { %900 = vmax.xlane.f32.xlu1 %v899_v58  ;;  %v2182_v59 = vpop.f32.mrf.mxu1 }
 0x2d6   : > { %v1074_v60 = vpop.f32.mrf.mxu1 }
 0x2d7   : > { %v1080_v61 = vmul.f32 0.35355338, %v1074_v60 }
 0x2d8   : > { %v2193_v62 = vpop.f32.mrf.mxu1 }
 0x2d9   : > { %v1081_v9 = vadd.f32 %v1080_v61, %v2851_v53 }
 0x2da   : > { %v1077_v63 = vpop.f32.mrf.mxu1 }
 0x2db   : > { %v1082_v10 = vsel %vm850_vm6, %v1081_v9, -inf }
 0x2dc   : > { %1083 = vmax.xlane.f32.xlu0 %v1082_v10  ;;  %v2194_v0 = vpop.f32.mrf.mxu1 }
 0x35d   : > { %v901_v1 = vpop.xlane.xlu1 %900 }
 0x35e   : > { %v902_v3 = vsub.f32 %v898_v56, %v901_v1 }
 0x360   : > { %v903_v5 = vmul.f32 1.442695, %v902_v3 }
 0x362   : > { %2381 = vpow2.f32 %v903_v5 }
 0x365   : > { %v1084_v8 = vpop.xlane.xlu0 %1083 }
 0x366   : > { %v1085_v11 = vsub.f32 %v1081_v9, %v1084_v8 }
 0x368   : > { %v1086_v12 = vmul.f32 1.442695, %v1085_v11 }
 0x36a   : > { %2383 = vpow2.f32 %v1086_v12 }
 0x36f   : > { %v2382_v14 = vpop.eup %2381 }
 0x370   : > { %v905_v15 = vsel %vm850_vm6, %v2382_v14, 0.0 }
 0x371   : > { %906 = vadd.xlane.f32.xlu0 %v905_v15 }
 0x377   : > { %v2384_v16 = vpop.eup %2383 }
 0x378   : > { %v1088_v17 = vsel %vm850_vm6, %v2384_v16, 0.0 }
 0x379   : > { %1089 = vadd.xlane.f32.xlu1 %v1088_v17 }
 0x387   : > { %912 = vrot.lane.b32.xlu0 %v2798_v41, %s2511_s0  ;;  %s2524_s0 = smov 72  }
 0x38a   : > { %1094 = vrot.lane.b32.xlu1 %v2798_v41, %s2512_s27 }
 0x38b   : > { %1287 = vrot.lane.b32.xlu0 %v2753_v7, %s2513_s20 }
 0x38e   : > { %1274 = vrot.lane.b32.xlu1 %v2747_v6, %s2513_s20  ;;  %s2526_s20 = smov 104  }
 0x38f   : > { %1252 = vrot.lane.b32.xlu0 %v2753_v7, %s2514_s6 }
 0x392   : > { %1239 = vrot.lane.b32.xlu1 %v2747_v6, %s2514_s6 }
 0x393   : > { %1283 = vrot.lane.b32.xlu0 %v2747_v6, %s2515_s29 }
 0x396   : > { %1270 = vrot.lane.b32.xlu1 %v2753_v7, %s2515_s29 }
 0x3fa   : > { %v907_v18 = vpop.xlane.xlu0 %906 }
 0x3fb   : > { %2385 = vrcp.f32 %v907_v18 }
 0x3fe   : > { %v913_v19 = vpop.permute.xlu0 %912 }
 0x3ff   : > { %v919_v20 = vsel %vm917_vm8, %v913_v19, 0 }
 0x400   : > { %2184 = vmatpush3.bf16.msra.mxu0 %v919_v20 }
 0x401   : > { %2195 = vmatprep.subr.bf16.mxu0 %v2495_v2 }
 0x402   : > { %v1090_v21 = vpop.xlane.xlu1 %1089  ;;  %v1288_v22 = vpop.permute.xlu0 %1287 }
 0x403   : > { %2387 = vrcp.f32 %v1090_v21  ;;  %v1290_v23 = vmul.f32 %v1288_v22, %v2801_v42 }
 0x405   : > { %1292 = vrot.lane.b32.xlu0 %v1290_v23, %s2503_s24 }
 0x406   : > { %v1095_v24 = vpop.permute.xlu1 %1094  ;;  %v1253_v26 = vpop.permute.xlu0 %1252 }
 0x407   : > { %v1255_v31 = vmul.f32 %v1253_v26, %v2801_v42  ;;  %v1100_v32 = vsel %vm917_vm8, %v1095_v24, 0 }
 0x408   : > { %v2386_v25 = vpop.eup %2385 }
 0x409   : > { %1248 = vrot.lane.b32.xlu0 %v2747_v6, %s2516_s19  ;;  %v909_v27 = vmul.f32 %v2386_v25, %v2382_v14 }
 0x40a   : > { %v1275_v28 = vpop.permute.xlu1 %1274  ;;  %v1284_v44 = vpop.permute.xlu0 %1283 }
 0x40b   : > { %v1277_v29 = vmul.f32 %v1275_v28, %v2801_v42  ;;  %v910_v30 = vpack.c.bf16 %v909_v27, %v909_v27  ;;  %v1286_v45 = vmul.f32 %v1284_v44, %v2801_v42 }
 0x40d   : > { %1279 = vrot.lane.b32.xlu1 %v1277_v29, %s2503_s24  ;;  %2186 = vmatmul.mubr.msk.bf16.vlgmr.msra.gmra.mxu0 %vm850_vm6, %v910_v30 }
 0x40e   : > { %2196 = vmatpush3.bf16.msra.mxu0 %v1100_v32  ;;  %1257 = vrot.lane.b32.xlu0 %v1255_v31, %s2503_s24  ;;  %v1240_v34 = vpop.permute.xlu1 %1239 }
 0x40f   : > { %2197 = vmatprep.mubr.msk.bf16.mxu0 %vm2496_vm1, %v2495_v2  ;;  %2207 = vmatprep.subr.bf16.mxu0 %v2495_v2  ;;  %v1242_v36 = vmul.f32 %v1240_v34, %v2801_v42 }
 0x410   : > { %v2388_v33 = vpop.eup %2387 }
 0x411   : > { %1235 = vrot.lane.b32.xlu1 %v2753_v7, %s2516_s19  ;;  %v1092_v35 = vmul.f32 %v2388_v33, %v2384_v16 }
 0x412   : > { %v1271_v48 = vpop.permute.xlu1 %1270 }
 0x413   : > { %v1093_v37 = vpack.c.bf16 %v1092_v35, %v1092_v35  ;;  %v1273_v50 = vmul.f32 %v1271_v48, %v2801_v42 }
 0x415   : > { %1244 = vrot.lane.b32.xlu1 %v1242_v36, %s2503_s24  ;;  %2198 = vmatmul.mubr.msk.bf16.vlgmr.msra.gmra.mxu0 %vm850_vm6, %v1093_v37 }
 0x416   : > { %2209 = vmatprep.mubr.msk.bf16.mxu0 %vm2496_vm1, %v2495_v2  ;;  %2208 = vmatpush3.bf16.msra.mxu0 %v1193_v39 }
 0x417   : > { %2219 = vmatprep.subr.bf16.mxu0 %v2495_v2 }
 0x477   : > { %v1293_v46 = vpop.permute.xlu0 %1292 }
 0x478   : > { %v1295_v47 = vadd.f32 %v1293_v46, %v1286_v45 }
 0x47a   : > { %1301 = vrot.lane.b32.xlu0 %v1295_v47, %s2517_s25 }
 0x47b   : > { %v1249_v49 = vpop.permute.xlu0 %1248 }
 0x47c   : > { %v1251_v51 = vmul.f32 %v1249_v49, %v2801_v42 }
 0x47f   : > { %v1280_v52 = vpop.permute.xlu1 %1279 }
 0x480   : > { %v1282_v54 = vsub.f32 %v1273_v50, %v1280_v52  ;;  %v1258_v55 = vpop.permute.xlu0 %1257 }
 0x481   : > { %v1260_v56 = vadd.f32 %v1258_v55, %v1251_v51 }
 0x482   : > { %1297 = vrot.lane.b32.xlu1 %v1282_v54, %s2518_s21 }
 0x483   : > { %1266 = vrot.lane.b32.xlu0 %v1260_v56, %s2519_s2  ;;  %v1236_v57 = vpop.permute.xlu1 %1235 }
 0x484   : > { %v1238_v58 = vmul.f32 %v1236_v57, %v2801_v42 }
 0x487   : > { %1515 = vrot.lane.b32.xlu0 %v2753_v7, %s2520_s17  ;;  %v1245_v59 = vpop.permute.xlu1 %1244 }
 0x488   : > { %v1247_v60 = vsub.f32 %v1238_v58, %v1245_v59 }
 0x48a   : > { %1262 = vrot.lane.b32.xlu1 %v1247_v60, %s2521_s15 }
 0x48b   : > { %1467 = vrot.lane.b32.xlu0 %v2747_v6, %s2522_s3 }
 0x48e   : > { %1502 = vrot.lane.b32.xlu1 %v2747_v6, %s2520_s17 }
 0x48f   : > { %1480 = vrot.lane.b32.xlu0 %v2753_v7, %s2522_s3 }
 0x493   : > { %1498 = vrot.lane.b32.xlu0 %v2753_v7, %s2512_s27 }
 0x497   : > { %1511 = vrot.lane.b32.xlu0 %v2747_v6, %s2512_s27  ;;  %s2525_s27 = smov 76  }
 0x4cd   : > { %v955_v61 = vpop.f32.mrf.mxu0 }
 0x4ce   : > { %v961_v62 = vpack.c.bf16 %v955_v61, %v955_v61 }
 0x4cf   : > { %v2187_v9 = vpop.f32.mrf.mxu0 }
 0x4d0   : > { %2210 = vmatmul.mubr.msk.bf16.vlgmr.msra.gmra.mxu0 %vm850_vm6, %v961_v62 }
 0x4d1   : > { %v958_v63 = vpop.f32.mrf.mxu0  ;;  %2221 = vmatprep.mubr.msk.bf16.mxu0 %vm2496_vm1, %v2495_v2 }
 0x4d3   : > { %v2188_v10 = vpop.f32.mrf.mxu0 }
 0x4d5   : > { %v1136_v0 = vpop.f32.mrf.mxu0 }
 0x4d6   : > { %v1142_v1 = vpack.c.bf16 %v1136_v0, %v1136_v0 }
 0x4d7   : > { %v2199_v3 = vpop.f32.mrf.mxu0 }
 0x4d8   : > { %2204 = vmatmul.mubr.msk.bf16.vlgmr.msra.gmra.mxu1 %vm850_vm6, %v1142_v1 }
 0x4d9   : > { %v1139_v5 = vpop.f32.mrf.mxu0  ;;  %2215 = vmatprep.mubr.msk.bf16.mxu1 %vm2496_vm1, %v2495_v2 }
 0x4db   : > { %v2200_v8 = vpop.f32.mrf.mxu0 }
 0x4ec   : > { %v1302_v11 = vpop.permute.xlu0 %1301 }
 0x4f4   : > { %v1298_v12 = vpop.permute.xlu1 %1297 }
 0x4f5   : > { %v1304_v14 = vsel %vm811_vm5, %v1298_v12, %v1302_v11  ;;  %v1267_v17 = vpop.permute.xlu0 %1266 }
 0x4f6   : > { %v1306_v15 = vpack.c.bf16 %v1304_v14, %v1304_v14 }
 0x4f8   : > { %v1311_v16 = vsel %vm850_vm6, %v1306_v15, 0 }
 0x4f9   : > { %2214 = vmatpush3.bf16.xpose.msra.mxu1 %v1311_v16  ;;  %v1516_v23 = vpop.permute.xlu0 %1515 }
 0x4fa   : > { %2225 = vmatprep.subr.bf16.mxu1 %v2495_v2  ;;  %v1518_v24 = vmul.f32 %v1516_v23, %v2801_v42 }
 0x4fc   : > { %v1263_v18 = vpop.permute.xlu1 %1262 }
 0x4fd   : > { %v1269_v19 = vsel %vm811_vm5, %v1263_v18, %v1267_v17  ;;  %v1468_v25 = vpop.permute.xlu0 %1467 }
 0x4fe   : > { %v1305_v20 = vpack.c.bf16 %v1269_v19, %v1269_v19  ;;  %v1470_v26 = vmul.f32 %v1468_v25, %v2801_v42 }
 0x500   : > { %v1503_v21 = vpop.permute.xlu1 %1502  ;;  %2216 = vmatmul.mubr.msk.bf16.vlgmr.msra.gmra.mxu1 %vm850_vm6, %v1305_v20 }
 0x501   : > { %v1505_v22 = vmul.f32 %v1503_v21, %v2801_v42  ;;  %2227 = vmatprep.mubr.msk.bf16.mxu1 %vm2496_vm1, %v2495_v2  ;;  %v1481_v36 = vpop.permute.xlu0 %1480 }
 0x502   : > { %v1483_v48 = vmul.f32 %v1481_v36, %v2801_v42 }
 0x503   : > { %1507 = vrot.lane.b32.xlu0 %v1505_v22, %s2503_s24  ;;  %v782_v22 = vld [vmem:[%s2711_s1 + $0x8] sm:$0xf] }
 0x504   : > { %v1420_v23 = vsel %vm917_vm8, %v782_v22, 0 }
 0x505   : > { %v1499_v37 = vpop.permute.xlu0 %1498  ;;  %2226 = vmatpush3.bf16.msra.mxu1 %v1420_v23 }
 0x506   : > { %v1501_v50 = vmul.f32 %v1499_v37, %v2801_v42  ;;  %2237 = vmatprep.subr.bf16.mxu1 %v2495_v2 }
 0x507   : > { %1520 = vrot.lane.b32.xlu0 %v1518_v24, %s2503_s24 }
 0x509   : > { %v1512_v44 = vpop.permute.xlu0 %1511 }
 0x50a   : > { %v1514_v54 = vmul.f32 %v1512_v44, %v2801_v42 }
 0x50b   : > { %1463 = vrot.lane.b32.xlu0 %v2753_v7, %s2523_s16 }
 0x50f   : > { %1476 = vrot.lane.b32.xlu0 %v2747_v6, %s2523_s16 }
 0x513   : > { %1472 = vrot.lane.b32.xlu0 %v1470_v26, %s2503_s24 }
 0x575   : > { %v1508_v46 = vpop.permute.xlu0 %1507 }
 0x576   : > { %v1510_v52 = vsub.f32 %v1501_v50, %v1508_v46  ;;  %v783_v46 = vld [vmem:[%s2711_s1 + $0xc] sm:$0xf] }
 0x579   : > { %v1521_v47 = vpop.permute.xlu0 %1520 }
 0x57a   : > { %v1523_v55 = vadd.f32 %v1521_v47, %v1514_v54  ;;  %v1648_v47 = vsel %vm917_vm8, %v783_v46, 0 }
 0x57d   : > { %v1464_v49 = vpop.permute.xlu0 %1463 }
 0x57e   : > { %v1466_v57 = vmul.f32 %v1464_v49, %v2801_v42 }
 0x581   : > { %v1477_v51 = vpop.permute.xlu0 %1476 }
 0x582   : > { %v1479_v61 = vmul.f32 %v1477_v51, %v2801_v42 }
 0x585   : > { %v1473_v56 = vpop.permute.xlu0 %1472 }
 0x586   : > { %v1475_v58 = vsub.f32 %v1466_v57, %v1473_v56 }
 0x590   : > { %v1229_v27 = vpop.f32.mrf.mxu0 }
 0x592   : > { %v2211_v28 = vpop.f32.mrf.mxu0 }
 0x594   : > { %v1232_v29 = vpop.f32.mrf.mxu0 }
 0x596   : > { %v2212_v30 = vpop.f32.mrf.mxu0 }
 0x598   : > { %v1183_v31 = vpop.f32.mrf.mxu1 }
 0x599   : > { %v2929_v32 = vadd.f32 %v1229_v27, %v1183_v31 }
 0x59a   : > { %v2205_v33 = vpop.f32.mrf.mxu1 }
 0x59c   : > { %v1186_v34 = vpop.f32.mrf.mxu1 }
 0x59e   : > { %v2206_v35 = vpop.f32.mrf.mxu1 }
 0x5c0   : > { %v1347_v7 = vpop.f32.mrf.mxu1 }
 0x5c1   : > { %v1353_v38 = vmul.f32 0.35355338, %v1347_v7 }
 0x5c2   : > { %v2217_v39 = vpop.f32.mrf.mxu1 }
 0x5c3   : > { %v1354_v6 = vadd.f32 %v1353_v38, %v2851_v53 }
 0x5c4   : > { %v1350_v40 = vpop.f32.mrf.mxu1 }
 0x5c5   : > { %v1355_v43 = vsel %vm850_vm6, %v1354_v6, -inf }
 0x5c6   : > { %1356 = vmax.xlane.f32.xlu1 %v1355_v43  ;;  %v2218_v45 = vpop.f32.mrf.mxu1 }
 0x5d7   : > { %1485 = vrot.lane.b32.xlu1 %v1483_v48, %s2503_s24  ;;  %s2527_s24 = smov 108  }
 0x5db   : > { %1367 = vrot.lane.b32.xlu1 %v2798_v41, %s2515_s29 }
 0x5df   : > { %1525 = vrot.lane.b32.xlu1 %v1510_v52, %s2524_s0 }
 0x5e3   : > { %1529 = vrot.lane.b32.xlu1 %v1523_v55, %s2525_s27 }
 0x5e7   : > { %1490 = vrot.lane.b32.xlu1 %v1475_v58, %s2526_s20  ;;  %v1693_v58 = vld [vmem:[%s642_s30] sm:$0x1] }
 0x64f   : > { %v1357_v59 = vpop.xlane.xlu1 %1356 }
 0x650   : > { %v1358_v60 = vsub.f32 %v1354_v6, %v1357_v59  ;;  %v1694_v59 = vunpack.c.l.bf16 %v1693_v58 }
 0x652   : > { %v1359_v62 = vmul.f32 1.442695, %v1358_v60  ;;  %v1691_v60 = vunpack.c.l.bf16 %v2742_v4 }
 0x653   : > { %v1486_v9 = vpop.permute.xlu1 %1485 }
 0x654   : > { %2389 = vpow2.f32 %v1359_v62  ;;  %v1488_v63 = vadd.f32 %v1486_v9, %v1479_v61  ;;  %v1698_v9 = vrot.slane %v1694_v59, %v2785_v13 }
 0x656   : > { %1494 = vrot.lane.b32.xlu1 %v1488_v63, %s2527_s24 }
 0x657   : > { %v1368_v10 = vpop.permute.xlu1 %1367 }
 0x658   : > { %v1373_v0 = vsel %vm917_vm8, %v1368_v10, 0 }
 0x659   : > { %2220 = vmatpush3.bf16.msra.mxu0 %v1373_v0 }
 0x65a   : > { %2231 = vmatprep.subr.bf16.mxu0 %v2495_v2 }
 0x65b   : > { %v1526_v8 = vpop.permute.xlu1 %1525 }
 0x65f   : > { %v1530_v42 = vpop.permute.xlu1 %1529 }
 0x660   : > { %v1532_v11 = vsel %vm811_vm5, %v1526_v8, %v1530_v42 }
 0x661   : > { %v2390_v1 = vpop.eup %2389  ;;  %v1534_v14 = vpack.c.bf16 %v1532_v11, %v1532_v11 }
 0x662   : > { %v1361_v3 = vsel %vm850_vm6, %v2390_v1, 0.0 }
 0x663   : > { %1362 = vadd.xlane.f32.xlu0 %v1361_v3  ;;  %v1491_v15 = vpop.permute.xlu1 %1490  ;;  %v1539_v19 = vsel %vm850_vm6, %v1534_v14, 0  ;;  %v2375_v14 = vld [vmem:[%s2728_s28 + $0x8] sm:$0xff]  }
 0x6c8   : > { %v1495_v18 = vpop.permute.xlu1 %1494 }
 0x6c9   : > { %v1497_v20 = vsel %vm811_vm5, %v1491_v15, %v1495_v18  ;;  %v2376_v15 = vld [vmem:[%s2728_s28] sm:$0xff]  }
 0x6ca   : > { %v1533_v21 = vpack.c.bf16 %v1497_v20, %v1497_v20  ;;  %v1721_v20 = vld [vmem:[%s648_s18] sm:$0x1] }
 0x6cb   : > { %v1722_v22 = vunpack.c.l.bf16 %v1721_v20 }
 0x6ec   : > { %v1363_v5 = vpop.xlane.xlu0 %1362 }
 0x6ed   : > { %2391 = vrcp.f32 %v1363_v5 }
 0x6fa   : > { %v2392_v12 = vpop.eup %2391 }
 0x6fb   : > { %v1365_v16 = vmul.f32 %v2392_v12, %v2390_v1 }
 0x6fd   : > { %v1366_v17 = vpack.c.bf16 %v1365_v16, %v1365_v16 }
 0x6ff   : > { %2222 = vmatmul.mubr.msk.bf16.vlgmr.msra.gmra.mxu0 %vm850_vm6, %v1366_v17 }
 0x700   : > { %2232 = vmatpush3.bf16.xpose.msra.mxu0 %v1539_v19  ;;  %2233 = vmatprep.mubr.msk.bf16.mxu0 %vm2496_vm1, %v2495_v2  ;;  %v1714_v19 = vld [vmem:[%s645_s4] sm:$0x1]  ;;  %s3123_s4 = sld [smem:[#allocation9_spill]] }
 0x701   : > { %2243 = vmatprep.subr.bf16.mxu0 %v2495_v2 }
 0x706   : > { %p2125_p1 = scmp.ne.s32.totalorder %s3123_s4, 1 }
 0x707   : > { %2234 = vmatmul.mubr.msk.bf16.vlgmr.msra.gmra.mxu0 %vm850_vm6, %v1533_v21  ;;  %v1715_v21 = vunpack.c.l.bf16 %v1714_v19 }
 0x708   : > { %2245 = vmatprep.mubr.msk.bf16.mxu0 %vm2496_vm1, %v2495_v2  ;;  %2244 = vmatpush3.bf16.msra.mxu0 %v1648_v47 }
 0x709   : > { %2257 = vmatprep.subr.bf16.mxu0 %v2495_v2  ;;  %v1719_v23 = vrot.slane %v1715_v21, %v2785_v13 }
 0x7bf   : > { %v1409_v24 = vpop.f32.mrf.mxu0 }
 0x7c0   : > { %v1415_v25 = vpack.c.bf16 %v1409_v24, %v1409_v24 }
 0x7c1   : > { %v2223_v26 = vpop.f32.mrf.mxu0 }
 0x7c2   : > { %2228 = vmatmul.mubr.msk.bf16.vlgmr.msra.gmra.mxu1 %vm850_vm6, %v1415_v25  ;;  %v1726_v26 = vrot.slane %v1722_v22, %v2785_v13 }
 0x7c3   : > { %v1412_v27 = vpop.f32.mrf.mxu0  ;;  %2239 = vmatprep.mubr.msk.bf16.mxu1 %vm2496_vm1, %v2495_v2 }
 0x7c5   : > { %v2224_v28 = vpop.f32.mrf.mxu0 }
 0x7c7   : > { %v1575_v29 = vpop.f32.mrf.mxu0 }
 0x7c8   : > { %v1581_v30 = vmul.f32 0.35355338, %v1575_v29 }
 0x7c9   : > { %v2235_v31 = vpop.f32.mrf.mxu0 }
 0x7ca   : > { %v1582_v33 = vadd.f32 %v1581_v30, %v2851_v53  ;;  %v2377_v30 = vld [vmem:[%s2734_s8 + $0x18] sm:$0xff]   ;;  %v2378_v31 = vld [vmem:[%s2734_s8 + $0x10] sm:$0xff]  }
 0x7cb   : > { %v1578_v34 = vpop.f32.mrf.mxu0 }
 0x7cc   : > { %v1583_v35 = vsel %vm850_vm6, %v1582_v33, -inf  ;;  %v2380_v34 = vld [vmem:[%s2734_s8] sm:$0xff]  }
 0x7cd   : > { %1584 = vmax.xlane.f32.xlu0 %v1583_v35  ;;  %v2236_v36 = vpop.f32.mrf.mxu0 }
 0x7e3   : > { %1595 = vrot.lane.b32.xlu0 %v2798_v41, %s2502_s22 }
 0x856   : > { %v1585_v37 = vpop.xlane.xlu0 %1584 }
 0x857   : > { %v1586_v7 = vsub.f32 %v1582_v33, %v1585_v37  ;;  %v2379_v33 = vld [vmem:[%s2734_s8 + $0x8] sm:$0xff]  }
 0x859   : > { %v1587_v38 = vmul.f32 1.442695, %v1586_v7 }
 0x85a   : > { %v1596_v39 = vpop.permute.xlu0 %1595 }
 0x85b   : > { %2393 = vpow2.f32 %v1587_v38  ;;  %v1601_v6 = vsel %vm917_vm8, %v1596_v39, 0 }
 0x85c   : > { %2238 = vmatpush3.bf16.msra.mxu1 %v1601_v6 }
 0x85d   : > { %2249 = vmatprep.subr.bf16.mxu1 %v2495_v2 }
 0x868   : > { %v2394_v53 = vpop.eup %2393 }
 0x869   : > { %v1589_v40 = vsel %vm850_vm6, %v2394_v53, 0.0 }
 0x86a   : > { %1590 = vadd.xlane.f32.xlu1 %v1589_v40 }
 0x882   : > { %v1456_v43 = vpop.f32.mrf.mxu1 }
 0x883   : > { %v1462_v44 = vadd.f32 %v1456_v43, %v2929_v32 }
 0x884   : > { %v2229_v45 = vpop.f32.mrf.mxu1 }
 0x886   : > { %v1459_v41 = vpop.f32.mrf.mxu1 }
 0x888   : > { %v2230_v48 = vpop.f32.mrf.mxu1 }
 0x8f3   : > { %v1591_v49 = vpop.xlane.xlu1 %1590 }
 0x8f4   : > { %2395 = vrcp.f32 %v1591_v49 }
 0x901   : > { %v2396_v50 = vpop.eup %2395 }
 0x902   : > { %v1593_v51 = vmul.f32 %v2396_v50, %v2394_v53 }
 0x904   : > { %v1594_v52 = vpack.c.bf16 %v1593_v51, %v1593_v51 }
 0x906   : > { %2240 = vmatmul.mubr.msk.bf16.vlgmr.msra.gmra.mxu1 %vm850_vm6, %v1594_v52 }
 0x907   : > { %2253 = vmatprep.mubr.msk.bf16.mxu1 %vm2496_vm1, %v2495_v2  ;;  %2250 = vmatpush3.bf16.msra.mxu1 %v2375_v14 }
 0x908   : > { %2251 = vmatprep.subr.bf16.mxu1 %v2495_v2 }
 0x90b   : > { %2252 = vmatpush3.bf16.msra.mxu1 %v2376_v15 }
 0x9c6   : > { %v1637_v32 = vpop.f32.mrf.mxu1 }
 0x9c7   : > { %v1643_v54 = vpack.c.bf16 %v1637_v32, %v1637_v32 }
 0x9c8   : > { %v2241_v55 = vpop.f32.mrf.mxu1 }
 0x9c9   : > { %2246 = vmatmul.mubr.msk.bf16.vlgmr.msra.gmra.mxu0 %vm850_vm6, %v1643_v54 }
 0x9ca   : > { %v1640_v56 = vpop.f32.mrf.mxu1  ;;  %2265 = vmatprep.mubr.msk.bf16.mxu0 %vm2496_vm1, %v2495_v2  ;;  %2258 = vmatpush3.bf16.msra.mxu0 %v2377_v30 }
 0x9cb   : > { %2259 = vmatprep.subr.bf16.mxu0 %v2495_v2 }
 0x9cc   : > { %v2242_v57 = vpop.f32.mrf.mxu1 }
 0x9ce   : > { %2260 = vmatpush3.bf16.msra.mxu0 %v2378_v31 }
 0x9cf   : > { %2261 = vmatprep.subr.bf16.mxu0 %v2495_v2 }
 0x9d2   : > { %2262 = vmatpush3.bf16.msra.mxu0 %v2379_v33 }
 0x9d3   : > { %2263 = vmatprep.subr.bf16.mxu0 %v2495_v2 }
 0x9d6   : > { %2264 = vmatpush3.bf16.msra.mxu0 %v2380_v34 }
 0xa89   : > { %v1684_v61 = vpop.f32.mrf.mxu0 }
 0xa8a   : > { %v1690_v62 = vadd.f32 %v1684_v61, %v1462_v44 }
 0xa8b   : > { %v2247_v63 = vpop.f32.mrf.mxu0 }
 0xa8c   : > { %v1692_v10 = vadd.f32 %v1691_v60, %v1690_v62 }
 0xa8d   : > { %v1687_v0 = vpop.f32.mrf.mxu0 }
 0xa8e   : > { %v1699_v1 = vadd.f32 %v1698_v9, %v1692_v10 }
 0xa8f   : > { %v2248_v3 = vpop.f32.mrf.mxu0 }
 0xa90   : > { %v1700_v5 = vsel %vm692_vm2, %v1699_v1, 0.0 }
 0xa91   : > { %1701 = vadd.xlane.f32.xlu0 %v1700_v5 }
 0xb1a   : > { %v1702_v8 = vpop.xlane.xlu0 %1701 }
 0xb1b   : > { %v1704_v42 = vmul.f32 0.03125, %v1702_v8 }
 0xb1d   : > { %v1705_v11 = vsub.f32 %v1699_v1, %v1704_v42 }
 0xb1f   : > { %v1706_v4 = vmul.f32 %v1705_v11, %v1705_v11 }
 0xb21   : > { %v1707_v12 = vsel %vm692_vm2, %v1706_v4, 0.0 }
 0xb22   : > { %1708 = vadd.xlane.f32.xlu1 %v1707_v12 }
 0xbab   : > { %v1709_v16 = vpop.xlane.xlu1 %1708 }
 0xbac   : > { %v1710_v17 = vmul.f32 0.03125, %v1709_v16 }
 0xbae   : > { %v1711_v18 = vadd.f32 1e-05, %v1710_v17 }
 0xbb0   : > { %2397 = vrsqrt.f32 %v1711_v18 }
 0xbbd   : > { %v2398_v24 = vpop.eup %2397 }
 0xbbe   : > { %v1713_v25 = vmul.f32 %v2398_v24, %v1705_v11 }
 0xbc0   : > { %v1720_v27 = vmul.f32 %v1719_v23, %v1713_v25 }
 0xbc2   : > { %v1727_v28 = vadd.f32 %v1726_v26, %v1720_v27 }
 0xbc4   : > { %v1728_v29 = vpack.c.bf16 %v1727_v28, %v1727_v28 }
 0xbc6   : > { %2254 = vmatmul.mubr.msk.bf16.vlgmr.msra.gmra.mxu1 %vm692_vm2, %v1728_v29 }
 0xc86   : > { %v1782_v13 = vpop.f32.mrf.mxu1 }
 0xc87   : > { %v1788_v35 = vmul.f32 %v1782_v13, %v1782_v13 }
 0xc88   : > { %v2255_v36 = vpop.f32.mrf.mxu1 }
 0xc89   : > { %v1789_v37 = vmul.f32 %v1788_v35, %v1782_v13 }
 0xc8a   : > { %v1785_v7 = vpop.f32.mrf.mxu1 }
 0xc8b   : > { %v1790_v38 = vmul.f32 0.044715, %v1789_v37 }
 0xc8c   : > { %v2256_v39 = vpop.f32.mrf.mxu1 }
 0xc8d   : > { %v1791_v6 = vadd.f32 %v1790_v38, %v1782_v13 }
 0xc8f   : > { %v1792_v53 = vmul.f32 0.7978846, %v1791_v6 }
 0xc91   : > { %2399 = vtanh.f32 %v1792_v53 }
 0xc9e   : > { %v2400_v40 = vpop.eup %2399 }
 0xc9f   : > { %v1794_v43 = vadd.f32 1.0, %v2400_v40 }
 0xca1   : > { %v1795_v44 = vmul.f32 0.5, %v1794_v43 }
 0xca3   : > { %v1796_v45 = vmul.f32 %v1795_v44, %v1782_v13 }
 0xca5   : > { %v1797_v41 = vpack.c.bf16 %v1796_v45, %v1796_v45 }
 0xca7   : > { %2266 = vmatmul.mubr.msk.bf16.vlgmr.msra.gmra.mxu0 %vm1830_vm9, %v1797_v41 }
 0xd67   : > { %v1868_v2 = vpop.f32.mrf.mxu0 }
 0xd68   : > { %v1874_v46 = vadd.f32 %v1868_v2, %v1699_v1 }
 0xd69   : > { %v2267_v47 = vpop.f32.mrf.mxu0  ;;  %1881 = sbr.rel (%p2125_p1) target bundleno = 3439 (0xd6f), region = 84 }
 0xd6a   : > { %v1875_v48 = vpack.c.bf16 %v1874_v46, %v1874_v46 }
 0xd6b   : > { %v1871_v49 = vpop.f32.mrf.mxu0 }
 0xd6c   : > { %1877 = vst.msk [vmem:[#allocation2] sm:$0xf] %vm1876_vm10, %v1875_v48 }
 0xd6d   : > { %v2268_v50 = vpop.f32.mrf.mxu0 }
 0xd6e   : > { %1882 = vst.msk [vmem:[%s611_s14] sm:$0xf] %vm1876_vm10, %v1875_v48 }
 0xd6f PF: > { %s3124_s8 = sld [smem:[#allocation10_spill]]  ;;  %s1897_s15 = sshll.u32 %s611_s14, 4  ;;  %s1898_s15 = int_to_ptr.vmem [resolvable:$true] %s1897_s15 }
 0xd70   : > { %s3125_s26 = sld [smem:[#allocation7_spill]]  ;;  %s2401_s0 = scalar_lea.vmem %s1898_s15, 64 }
 0xd71   : > { %s3127_s2 = sld [smem:[#allocation26_spill]]  ;;  %p2402_p2 = scmp.ne.s32.totalorder %s1898_s15, %s2401_s0 }
 0xd72   : > { %s2528_s27 = smov [#allocation3]  }
 0xd73   : > { %p2403_p4 = pnand %p2402_p2, %p2653_p3  ;;  %s2405_s20 = sshll.u32 %s2528_s27, 4  ;;  %s2406_s20 = int_to_ptr.vmem [resolvable:$false] %s2405_s20 }
 0xd74   : > { %s2407_s24 = scalar_lea.vmem %s2406_s20, 128  ;;  %p2408_p6 = scmp.lt.s32.totalorder %s1898_s15, %s2406_s20 }
 0xd75   : > { %s2127_s28 = sshll.u32 %s3124_s8, 6  ;;  %p2404_p5 = pneg %p2403_p4 }
 0xd76   : > { %s3128_s3 = sand.u32 1, %s3125_s26   ;;  %p2409_p7 = scmp.lt.s32.totalorder %s2407_s24, %s2401_s0 }
 0xd77   : > { %s1895_s17 = scalar_lea.hbm %s3127_s2, %s2127_s28  ;;  %s1884_s16 = scalar_lea.sflag [#allocation4], %s3128_s3 }
 0xd78   : > { %p2410_p8 = por %p2409_p7, %p2408_p6 }
 0xd7a   : > { %p2411_p10 = pnand %p2410_p8, %p2404_p5 }
 0xd7c   : > { %2414 = shalt.err (!%p2411_p10)
}
 0xd7d   : > { %s2415_s1 = scalar_lea.hbm %s1895_s17, 64  ;;  %s2419_s22 = scalar_lea.hbm %s3127_s2, 128 }
 0xd7e   : > { %p2416_p11 = scmp.ne.s32.totalorder %s1895_s17, %s2415_s1  ;;  %p2420_p0 = scmp.lt.s32.totalorder %s1895_s17, %s3127_s2 }
 0xd7f   : > { %p2421_p1 = scmp.lt.s32.totalorder %s2419_s22, %s2415_s1 }
 0xd80   : > { %p2417_p12 = pnand %p2416_p11, %p2653_p3 }
 0xd81   : > { %p2422_p2 = por %p2421_p1, %p2420_p0 }
 0xd82   : > { %p2418_p13 = pneg %p2417_p12 }
 0xd84   : > { %p2423_p4 = pnand %p2422_p2, %p2418_p13 }
 0xd86   : > { %2426 = shalt.err (!%p2423_p4)
}
 0xd87   : > { %2269 = dma.vmem_to_hbm [thread:$0]  (%p2653_p3), %s1898_s15, 64, %s1895_s17, %s1884_s16  }
 0xd88 PF: > { %s3129_s29 = sld [smem:[#allocation13_spill]] }
 0xd89   : > { %s3130_s19 = sld [smem:[#allocation6_spill]] }
 0xd8e   : > { %p2275_p5 = scmp.ge.s32.totalorder %s3129_s29, 2 }
 0xd8f   : > { %s1909_s8 = sand.u32 1, %s3130_s19  }
 0xd90   : > { %p2272_p6 = pnand %p2275_p5, %p2663_p9  ;;  %s1910_s26 = scalar_lea.sflag [#allocation4], %s1909_s8 }
 0xd92   : > { %p2273_p7 = pneg %p2272_p6 }
 0xd94   : > { %2460 = dma.done.wait (%p2273_p7), %s1910_s26, 64  }
 0xd95   : > { %2462 = vsyncadd (%p2273_p7), %s1910_s26, 4294967232  ;;  %s27_s20 = sadd.s32 1, %s3129_s29   ;;  %s3132_s29 = sld [smem:[#allocation7_spill]] }
 0xd96   : > { %p24_p8 = scmp.ge.s32.totalorder %s27_s20, 6   ;;  %s3133_s30 = sld [smem:[#allocation8_spill]] }
 0xd97   : > { %s3134_s15 = sld [smem:[#allocation18_spill]] }
 0xd98   : > { %s3135_s16 = sld [smem:[#allocation11_spill]]  ;;  %26 = sbr.rel (!%p24_p8) target bundleno = 14 (0xe), region = 152 }
 0xd99   : > { %s3136_s17 = sld [smem:[#allocation12_spill]] }
 0xd9a   : > { %s3137_s18 = sld [smem:[#allocation14_spill]] }
 0xd9b   : > { %s3138_s19 = sld [smem:[#allocation16_spill]] }
 0xd9d   :  { %1915 = vsyncpa [#allocation4], 1 }
 0xd9e   :  { %1917 = vsyncpa [#allocation4 + $0x1], 1 }

</bundles_post_ra>
